<compile_context>
chip_gen: v6e
topology: v6e:2x2x1
jax: 0.10.0
libtpu: 0.0.40
codegen_flags: <defaults>
</compile_context>

<pallas_src>
import jax
import jax.numpy as jnp
from jax.experimental import pallas as pl
from jax.experimental.pallas import tpu as pltpu

N_EMBD = 72
N_HEAD = 6
HEAD_SIZE = N_EMBD // N_HEAD
BLOCK_SIZE = 8          # seq length T
EPS = 1e-5              # torch nn.LayerNorm default

C_PAD = 128             # lane-dense padded channel dim
H4 = 4 * N_EMBD         # 288
H4_PAD = 384            # lane-dense padded FF hidden dim
NEG_BIG = -1e30


def _layernorm_noaffine(x):
    # x: (N, C_PAD) with real channels in lanes [0, N_EMBD) and zeros elsewhere.
    # Zero padding does not perturb the sums, so 128-lane reductions give exact
    # stats over the 72 real channels.  The padded lanes of the result are
    # (-mu * rsqrt) garbage, but every downstream weight has zero rows there,
    # so nothing is contaminated.  (Moment form E[x^2]-mu^2 is fine at these
    # activation scales.)
    inv_c = 1.0 / N_EMBD
    mu = jnp.sum(x, axis=-1, keepdims=True) * inv_c
    ex2 = jnp.sum(x * x, axis=-1, keepdims=True) * inv_c
    var = ex2 - mu * mu
    return (x - mu) * jax.lax.rsqrt(var + EPS)


def block_kernel(x_ref, wqkv_ref, bqkv_ref, wp_ref, bp_ref, w1_ref, b1_ref,
                 w2_ref, b2_ref, hm_ref, ss_ref, cm_ref, o_ref):
    B, T, CP = x_ref.shape
    BT = B * T
    HT = N_HEAD * T
    x = x_ref[...].reshape(BT, CP)                      # (16, 128)

    # ---- ln1 (affine + attention scale folded into w_qkv/b_qkv) + fused QKV ----
    h = _layernorm_noaffine(x)
    w_qkv = wqkv_ref[...].astype(jnp.float32)           # bf16 in HBM, f32 on MXU
    qkv = jnp.dot(h, w_qkv, preferred_element_type=jnp.float32) + bqkv_ref[...]
    q = qkv[:, 0 * CP:1 * CP].reshape(B, T, CP)          # Q already scaled
    k = qkv[:, 1 * CP:2 * CP].reshape(B, T, CP)
    v = qkv[:, 2 * CP:3 * CP].reshape(B, T, CP)

    # Block-masked multi-head attention: replicate K/V 6x along sublanes and
    # zero out every channel not belonging to that replica's head.  Row index
    # z = h*T + s of the expanded tensors enumerates (head, key-position).
    hm = hm_ref[...]                                     # (HT, CP) 0/1 mask
    k_exp = jnp.concatenate([k] * N_HEAD, axis=1) * hm   # (B, HT, CP)
    v_exp = jnp.concatenate([v] * N_HEAD, axis=1) * hm   # (B, HT, CP)

    # Scores for all heads in one batched einsum (contract the lane dim; no k.T).
    s = jnp.einsum("btc,bzc->btz", q, k_exp,
                   preferred_element_type=jnp.float32)   # (B, T, HT)
    s = s + cm_ref[...]                                  # additive causal mask
    s = s - jnp.max(s, axis=-1, keepdims=True)           # uniform shift per block
    p = jnp.exp(s)                                       # masked entries -> 0

    # Per-head softmax denominators via one tiny matmul: ss[z,y] = 1 iff z,y in
    # the same head block, so p @ ss broadcasts each block-sum across its lanes.
    p2 = p.reshape(BT, HT)
    denom = jnp.dot(p2, ss_ref[...], preferred_element_type=jnp.float32)
    p_norm = (p2 * pl.reciprocal(denom, approx=True)).reshape(B, T, HT)

    # Context lands directly lane-dense: ctx[b,t,c] = sum_s p[b,t,(c//hs)*T+s] v[b,s,c].
    ctx = jnp.einsum("btz,bzc->btc", p_norm, v_exp,
                     preferred_element_type=jnp.float32)  # (B, T, CP)

    sa = jnp.dot(ctx.reshape(BT, CP), wp_ref[...].astype(jnp.float32),
                 preferred_element_type=jnp.float32) + bp_ref[...]
    x1 = x + sa                                          # dropout -> identity

    # ---- ln2 (affine folded into w1/b1) + feed-forward (Linear->ReLU->Linear) ----
    h2 = _layernorm_noaffine(x1)
    ff = jnp.dot(h2, w1_ref[...].astype(jnp.float32),
                 preferred_element_type=jnp.float32) + b1_ref[...]
    ff = jnp.maximum(ff, 0.0)
    ff = jnp.dot(ff, w2_ref[...].astype(jnp.float32),
                 preferred_element_type=jnp.float32) + b2_ref[...]

    o_ref[...] = (x1 + ff).reshape(B, T, CP)


def _pad2(a, rows, cols):
    out = jnp.zeros((rows, cols), a.dtype)
    return out.at[: a.shape[0], : a.shape[1]].set(a)


def pack_block_params(p):
    """One-time packing: pad, fold LN affines + attention scale, cast to bf16."""
    C, T, hs = N_EMBD, BLOCK_SIZE, HEAD_SIZE
    scale = C ** (-0.5)                      # torch ref scales by n_embd

    to_full = lambda w: w.transpose(1, 0, 2).reshape(C, C)   # (H,C,hs) -> (C, H*hs)
    wq_p = _pad2(to_full(p["wq"]), C_PAD, C_PAD)
    wk_p = _pad2(to_full(p["wk"]), C_PAD, C_PAD)
    wv_p = _pad2(to_full(p["wv"]), C_PAD, C_PAD)
    w_qkv = jnp.concatenate([wq_p, wk_p, wv_p], axis=1)      # (128, 384)

    g1_p, be1_p = _pad2(p["g1"], 1, C_PAD), _pad2(p["be1"], 1, C_PAD)
    g2_p, be2_p = _pad2(p["g2"], 1, C_PAD), _pad2(p["be2"], 1, C_PAD)

    # Fold ln1 affine:  ln1(x) @ W = norm(x) @ (g1 * W) + be1 @ W
    b_qkv = be1_p @ w_qkv                                    # (1, 384)
    w_qkv = w_qkv * g1_p.reshape(C_PAD, 1)
    # Fold attention scale into the Q columns (and the Q part of the bias).
    qscale = jnp.concatenate([jnp.full((C_PAD,), scale, jnp.float32),
                              jnp.ones((2 * C_PAD,), jnp.float32)])
    w_qkv = w_qkv * qscale[None, :]
    b_qkv = b_qkv * qscale[None, :]

    wp = _pad2(p["wp_full"], C_PAD, C_PAD)                   # (128, 128)
    bp = _pad2(p["bp"], 1, C_PAD)

    # Fold ln2 affine into the first FF layer.
    w1 = _pad2(p["w1"], C_PAD, H4_PAD)                       # (128, 384)
    b1 = _pad2(p["b1"], 1, H4_PAD) + be2_p @ w1
    w1 = w1 * g2_p.reshape(C_PAD, 1)
    w2 = _pad2(p["w2"], H4_PAD, C_PAD)                       # (384, 128)
    b2 = _pad2(p["b2"], 1, C_PAD)

    # Attention constants: per-head channel mask, block-sum spread, causal mask.
    HT = N_HEAD * T
    z = jnp.arange(HT)
    c = jnp.arange(C_PAD)
    head_mask = ((c[None, :] // hs) == (z[:, None] // T)).astype(jnp.float32)   # (48,128)
    sum_spread = ((z[:, None] // T) == (z[None, :] // T)).astype(jnp.float32)   # (48,48)
    t = jnp.arange(T)
    causal_add = jnp.where(t[:, None] >= (z[None, :] % T), 0.0, NEG_BIG)
    causal_add = causal_add.astype(jnp.float32)[None]                           # (1,8,48)

    bf16 = lambda a: a.astype(jnp.bfloat16)
    return {
        "w_qkv": bf16(w_qkv), "b_qkv": b_qkv,
        "wp": bf16(wp), "bp": bp,
        "w1": bf16(w1), "b1": b1,
        "w2": bf16(w2), "b2": b2,
        "head_mask": head_mask, "sum_spread": sum_spread, "causal_add": causal_add,
    }


def transformer_block(x, packed):
    B, T, C = x.shape
    assert C == N_EMBD
    x_p = jnp.pad(x, ((0, 0), (0, 0), (0, C_PAD - C)))   # per-call data pad only

    vmem = pl.BlockSpec(memory_space=pltpu.MemorySpace.VMEM)
    out = pl.pallas_call(
        block_kernel,
        out_shape=jax.ShapeDtypeStruct((B, T, C_PAD), jnp.float32),
        in_specs=[vmem] * 12,
        out_specs=vmem,
        # Single grid step: whole working set (<0.5 MiB with bf16 weights) fits
        # comfortably in VMEM on v5e/v6e/v7x, so no blocking is needed.
    )(x_p, packed["w_qkv"], packed["b_qkv"], packed["wp"], packed["bp"],
      packed["w1"], packed["b1"], packed["w2"], packed["b2"],
      packed["head_mask"], packed["sum_spread"], packed["causal_add"])
    return out[:, :, :C]


def ref_block(x, p):
    """Pure-JAX reference matching the PyTorch forward pass (eval mode)."""
    def ln(v, g, b):
        mu = v.mean(-1, keepdims=True)
        var = ((v - mu) ** 2).mean(-1, keepdims=True)
        return (v - mu) / jnp.sqrt(var + EPS) * g + b

    B, T, C = x.shape
    h = ln(x, p["g1"], p["be1"])
    mask = jnp.tril(jnp.ones((T, T), bool))
    outs = []
    for hd in range(N_HEAD):
        q = h @ p["wq"][hd]
        k = h @ p["wk"][hd]
        v = h @ p["wv"][hd]
        wei = q @ jnp.swapaxes(k, -1, -2) * C ** (-0.5)
        wei = jnp.where(mask, wei, -jnp.inf)
        wei = jax.nn.softmax(wei, axis=-1)
        outs.append(wei @ v)
    sa = jnp.concatenate(outs, -1) @ p["wp_full"] + p["bp"]
    x1 = x + sa
    h2 = ln(x1, p["g2"], p["be2"])
    ff = jax.nn.relu(h2 @ p["w1"] + p["b1"]) @ p["w2"] + p["b2"]
    return x1 + ff


def init_params(key):
    ks = jax.random.split(key, 8)
    s = 0.02
    C, Hid = N_EMBD, 4 * N_EMBD
    wp_full = s * jax.random.normal(ks[3], (C, C), jnp.float32)
    return {
        "wq": s * jax.random.normal(ks[0], (N_HEAD, C, HEAD_SIZE), jnp.float32),
        "wk": s * jax.random.normal(ks[1], (N_HEAD, C, HEAD_SIZE), jnp.float32),
        "wv": s * jax.random.normal(ks[2], (N_HEAD, C, HEAD_SIZE), jnp.float32),
        "wp_full": wp_full,
        "bp": s * jax.random.normal(ks[4], (1, C), jnp.float32),
        "w1": s * jax.random.normal(ks[5], (C, Hid), jnp.float32),
        "b1": s * jax.random.normal(ks[6], (1, Hid), jnp.float32),
        "w2": s * jax.random.normal(ks[7], (Hid, C), jnp.float32),
        "b2": jnp.zeros((1, C), jnp.float32),
        "g1": jnp.ones((1, C), jnp.float32),    # torch nn.LayerNorm default init
        "be1": jnp.zeros((1, C), jnp.float32),
        "g2": jnp.ones((1, C), jnp.float32),
        "be2": jnp.zeros((1, C), jnp.float32),
    }


if __name__ == "__main__":
    key = jax.random.PRNGKey(0)
    kx, kp = jax.random.split(key)
    B, T, C = 2, BLOCK_SIZE, N_EMBD          # (2, 8, 72)
    x = jax.random.normal(kx, (B, T, C), jnp.float32)
    params = init_params(kp)

    packed = pack_block_params(params)        # one-time packing, hoisted out of the call
    fwd = jax.jit(transformer_block)
    out = jax.block_until_ready(fwd(x, packed))

    ref = ref_block(x, params)
    assert out.shape == (B, T, C)
    assert jnp.allclose(out, ref, atol=1e-3, rtol=1e-3), "mismatch vs JAX reference"
    print("KERNEL_OK")
</pallas_src>

<mosaic_0001>
module attributes {stable_mosaic.version = 11 : i64} {
  func.func @block_kernel(%arg0: memref<2x8x128xf32, #tpu.memory_space<vmem>>, %arg1: memref<128x384xbf16, #tpu.memory_space<vmem>>, %arg2: memref<1x384xf32, #tpu.memory_space<vmem>>, %arg3: memref<128x128xbf16, #tpu.memory_space<vmem>>, %arg4: memref<1x128xf32, #tpu.memory_space<vmem>>, %arg5: memref<128x384xbf16, #tpu.memory_space<vmem>>, %arg6: memref<1x384xf32, #tpu.memory_space<vmem>>, %arg7: memref<384x128xbf16, #tpu.memory_space<vmem>>, %arg8: memref<1x128xf32, #tpu.memory_space<vmem>>, %arg9: memref<48x128xf32, #tpu.memory_space<vmem>>, %arg10: memref<48x48xf32, #tpu.memory_space<vmem>>, %arg11: memref<1x8x48xf32, #tpu.memory_space<vmem>>, %arg12: memref<2x8x128xf32, #tpu.memory_space<vmem>>) attributes {dimension_semantics = [], scalar_prefetch = 0 : i64, scratch_operands = 0 : i64, tpu.core_type = #tpu.core_type<tc>} {
    %c0 = arith.constant 0 : index
    %c0_0 = arith.constant 0 : index
    %c0_1 = arith.constant 0 : index
    %0 = vector.load %arg0[%c0, %c0_0, %c0_1] : memref<2x8x128xf32, #tpu.memory_space<vmem>>, vector<2x8x128xf32>
    %1 = vector.shape_cast %0 : vector<2x8x128xf32> to vector<16x128xf32>
    %cst = arith.constant dense<0.000000e+00> : vector<16xf32>
    %2 = vector.multi_reduction <add>, %1, %cst [1] : vector<16x128xf32> to vector<16xf32>
    %3 = vector.shape_cast %2 : vector<16xf32> to vector<16x1xf32>
    %cst_2 = arith.constant 0.013888889 : f32
    %4 = vector.broadcast %cst_2 : f32 to vector<16x1xf32>
    %5 = arith.mulf %3, %4 : vector<16x1xf32>
    %6 = arith.mulf %1, %1 : vector<16x128xf32>
    %cst_3 = arith.constant dense<0.000000e+00> : vector<16xf32>
    %7 = vector.multi_reduction <add>, %6, %cst_3 [1] : vector<16x128xf32> to vector<16xf32>
    %8 = vector.shape_cast %7 : vector<16xf32> to vector<16x1xf32>
    %cst_4 = arith.constant 0.013888889 : f32
    %9 = vector.broadcast %cst_4 : f32 to vector<16x1xf32>
    %10 = arith.mulf %8, %9 : vector<16x1xf32>
    %11 = arith.mulf %5, %5 : vector<16x1xf32>
    %12 = arith.subf %10, %11 : vector<16x1xf32>
    %13 = vector.broadcast %5 : vector<16x1xf32> to vector<16x128xf32>
    %14 = arith.subf %1, %13 : vector<16x128xf32>
    %cst_5 = arith.constant 9.99999974E-6 : f32
    %15 = vector.broadcast %cst_5 : f32 to vector<16x1xf32>
    %16 = arith.addf %12, %15 : vector<16x1xf32>
    %17 = math.rsqrt %16 : vector<16x1xf32>
    %18 = vector.broadcast %17 : vector<16x1xf32> to vector<16x128xf32>
    %19 = arith.mulf %14, %18 : vector<16x128xf32>
    %c0_6 = arith.constant 0 : index
    %c0_7 = arith.constant 0 : index
    %20 = vector.load %arg1[%c0_6, %c0_7] : memref<128x384xbf16, #tpu.memory_space<vmem>>, vector<128x384xbf16>
    %21 = arith.extf %20 : vector<128x384xbf16> to vector<128x384xf32>
    %cst_8 = arith.constant dense<0.000000e+00> : vector<16x384xf32>
    %22 = tpu.matmul %19, %21, %cst_8 {dimension_numbers = #tpu.dot_dimension_numbers<[1], [0], [0], [1], [0, 0, 1, 1], [], []>} : vector<16x128xf32>, vector<128x384xf32>, vector<16x384xf32> -> vector<16x384xf32>
    %c0_9 = arith.constant 0 : index
    %c0_10 = arith.constant 0 : index
    %23 = vector.load %arg2[%c0_9, %c0_10] : memref<1x384xf32, #tpu.memory_space<vmem>>, vector<1x384xf32>
    %24 = vector.broadcast %23 : vector<1x384xf32> to vector<16x384xf32>
    %25 = arith.addf %22, %24 : vector<16x384xf32>
    %26 = vector.extract_strided_slice %25 {offsets = [0, 0], sizes = [16, 128], strides = [1, 1]} : vector<16x384xf32> to vector<16x128xf32>
    %27 = vector.shape_cast %26 : vector<16x128xf32> to vector<2x8x128xf32>
    %28 = vector.extract_strided_slice %25 {offsets = [0, 128], sizes = [16, 128], strides = [1, 1]} : vector<16x384xf32> to vector<16x128xf32>
    %29 = vector.shape_cast %28 : vector<16x128xf32> to vector<2x8x128xf32>
    %30 = vector.extract_strided_slice %25 {offsets = [0, 256], sizes = [16, 128], strides = [1, 1]} : vector<16x384xf32> to vector<16x128xf32>
    %31 = vector.shape_cast %30 : vector<16x128xf32> to vector<2x8x128xf32>
    %c0_11 = arith.constant 0 : index
    %c0_12 = arith.constant 0 : index
    %32 = vector.load %arg9[%c0_11, %c0_12] : memref<48x128xf32, #tpu.memory_space<vmem>>, vector<48x128xf32>
    %33 = tpu.concatenate %29, %29, %29, %29, %29, %29 in 1 : vector<2x8x128xf32>, vector<2x8x128xf32>, vector<2x8x128xf32>, vector<2x8x128xf32>, vector<2x8x128xf32>, vector<2x8x128xf32> -> vector<2x48x128xf32>
    %34 = vector.shape_cast %32 : vector<48x128xf32> to vector<1x48x128xf32>
    %35 = vector.broadcast %34 : vector<1x48x128xf32> to vector<2x48x128xf32>
    %36 = arith.mulf %33, %35 : vector<2x48x128xf32>
    %37 = tpu.concatenate %31, %31, %31, %31, %31, %31 in 1 : vector<2x8x128xf32>, vector<2x8x128xf32>, vector<2x8x128xf32>, vector<2x8x128xf32>, vector<2x8x128xf32>, vector<2x8x128xf32> -> vector<2x48x128xf32>
    %38 = vector.shape_cast %32 : vector<48x128xf32> to vector<1x48x128xf32>
    %39 = vector.broadcast %38 : vector<1x48x128xf32> to vector<2x48x128xf32>
    %40 = arith.mulf %37, %39 : vector<2x48x128xf32>
    "tpu.trace_start"() <{level = 10 : i32, message = "btc,bzc->btz"}> : () -> ()
    %cst_13 = arith.constant dense<0.000000e+00> : vector<2x8x48xf32>
    %41 = tpu.matmul %27, %36, %cst_13 {dimension_numbers = #tpu.dot_dimension_numbers<[2], [2], [1], [1], [0, 0, 0, 1, 1, 1], [0], [0]>} : vector<2x8x128xf32>, vector<2x48x128xf32>, vector<2x8x48xf32> -> vector<2x8x48xf32>
    "tpu.trace_stop"() : () -> ()
    %c0_14 = arith.constant 0 : index
    %c0_15 = arith.constant 0 : index
    %c0_16 = arith.constant 0 : index
    %42 = vector.load %arg11[%c0_14, %c0_15, %c0_16] : memref<1x8x48xf32, #tpu.memory_space<vmem>>, vector<1x8x48xf32>
    %43 = vector.broadcast %42 : vector<1x8x48xf32> to vector<2x8x48xf32>
    %44 = arith.addf %41, %43 : vector<2x8x48xf32>
    %cst_17 = arith.constant dense<0xFF800000> : vector<2x8xf32>
    %45 = vector.multi_reduction <maximumf>, %44, %cst_17 [2] : vector<2x8x48xf32> to vector<2x8xf32>
    %46 = vector.shape_cast %45 : vector<2x8xf32> to vector<2x8x1xf32>
    %47 = vector.broadcast %46 : vector<2x8x1xf32> to vector<2x8x48xf32>
    %48 = arith.subf %44, %47 : vector<2x8x48xf32>
    %49 = math.exp %48 : vector<2x8x48xf32>
    %50 = vector.shape_cast %49 : vector<2x8x48xf32> to vector<16x48xf32>
    %c0_18 = arith.constant 0 : index
    %c0_19 = arith.constant 0 : index
    %51 = vector.load %arg10[%c0_18, %c0_19] : memref<48x48xf32, #tpu.memory_space<vmem>>, vector<48x48xf32>
    %cst_20 = arith.constant dense<0.000000e+00> : vector<16x48xf32>
    %52 = tpu.matmul %50, %51, %cst_20 {dimension_numbers = #tpu.dot_dimension_numbers<[1], [0], [0], [1], [0, 0, 1, 1], [], []>} : vector<16x48xf32>, vector<48x48xf32>, vector<16x48xf32> -> vector<16x48xf32>
    %53 = tpu.reciprocal %52 {approx = true} : vector<16x48xf32> -> vector<16x48xf32>
    %54 = arith.mulf %50, %53 : vector<16x48xf32>
    %55 = vector.shape_cast %54 : vector<16x48xf32> to vector<2x8x48xf32>
    "tpu.trace_start"() <{level = 10 : i32, message = "btz,bzc->btc"}> : () -> ()
    %cst_21 = arith.constant dense<0.000000e+00> : vector<2x8x128xf32>
    %56 = tpu.matmul %55, %40, %cst_21 {dimension_numbers = #tpu.dot_dimension_numbers<[2], [1], [1], [2], [0, 0, 0, 1, 1, 2], [0], [0]>} : vector<2x8x48xf32>, vector<2x48x128xf32>, vector<2x8x128xf32> -> vector<2x8x128xf32>
    "tpu.trace_stop"() : () -> ()
    %57 = vector.shape_cast %56 : vector<2x8x128xf32> to vector<16x128xf32>
    %c0_22 = arith.constant 0 : index
    %c0_23 = arith.constant 0 : index
    %58 = vector.load %arg3[%c0_22, %c0_23] : memref<128x128xbf16, #tpu.memory_space<vmem>>, vector<128x128xbf16>
    %59 = arith.extf %58 : vector<128x128xbf16> to vector<128x128xf32>
    %cst_24 = arith.constant dense<0.000000e+00> : vector<16x128xf32>
    %60 = tpu.matmul %57, %59, %cst_24 {dimension_numbers = #tpu.dot_dimension_numbers<[1], [0], [0], [1], [0, 0, 1, 1], [], []>} : vector<16x128xf32>, vector<128x128xf32>, vector<16x128xf32> -> vector<16x128xf32>
    %c0_25 = arith.constant 0 : index
    %c0_26 = arith.constant 0 : index
    %61 = vector.load %arg4[%c0_25, %c0_26] : memref<1x128xf32, #tpu.memory_space<vmem>>, vector<1x128xf32>
    %62 = vector.broadcast %61 : vector<1x128xf32> to vector<16x128xf32>
    %63 = arith.addf %60, %62 : vector<16x128xf32>
    %64 = arith.addf %1, %63 : vector<16x128xf32>
    %cst_27 = arith.constant dense<0.000000e+00> : vector<16xf32>
    %65 = vector.multi_reduction <add>, %64, %cst_27 [1] : vector<16x128xf32> to vector<16xf32>
    %66 = vector.shape_cast %65 : vector<16xf32> to vector<16x1xf32>
    %cst_28 = arith.constant 0.013888889 : f32
    %67 = vector.broadcast %cst_28 : f32 to vector<16x1xf32>
    %68 = arith.mulf %66, %67 : vector<16x1xf32>
    %69 = arith.mulf %64, %64 : vector<16x128xf32>
    %cst_29 = arith.constant dense<0.000000e+00> : vector<16xf32>
    %70 = vector.multi_reduction <add>, %69, %cst_29 [1] : vector<16x128xf32> to vector<16xf32>
    %71 = vector.shape_cast %70 : vector<16xf32> to vector<16x1xf32>
    %cst_30 = arith.constant 0.013888889 : f32
    %72 = vector.broadcast %cst_30 : f32 to vector<16x1xf32>
    %73 = arith.mulf %71, %72 : vector<16x1xf32>
    %74 = arith.mulf %68, %68 : vector<16x1xf32>
    %75 = arith.subf %73, %74 : vector<16x1xf32>
    %76 = vector.broadcast %68 : vector<16x1xf32> to vector<16x128xf32>
    %77 = arith.subf %64, %76 : vector<16x128xf32>
    %cst_31 = arith.constant 9.99999974E-6 : f32
    %78 = vector.broadcast %cst_31 : f32 to vector<16x1xf32>
    %79 = arith.addf %75, %78 : vector<16x1xf32>
    %80 = math.rsqrt %79 : vector<16x1xf32>
    %81 = vector.broadcast %80 : vector<16x1xf32> to vector<16x128xf32>
    %82 = arith.mulf %77, %81 : vector<16x128xf32>
    %c0_32 = arith.constant 0 : index
    %c0_33 = arith.constant 0 : index
    %83 = vector.load %arg5[%c0_32, %c0_33] : memref<128x384xbf16, #tpu.memory_space<vmem>>, vector<128x384xbf16>
    %84 = arith.extf %83 : vector<128x384xbf16> to vector<128x384xf32>
    %cst_34 = arith.constant dense<0.000000e+00> : vector<16x384xf32>
    %85 = tpu.matmul %82, %84, %cst_34 {dimension_numbers = #tpu.dot_dimension_numbers<[1], [0], [0], [1], [0, 0, 1, 1], [], []>} : vector<16x128xf32>, vector<128x384xf32>, vector<16x384xf32> -> vector<16x384xf32>
    %c0_35 = arith.constant 0 : index
    %c0_36 = arith.constant 0 : index
    %86 = vector.load %arg6[%c0_35, %c0_36] : memref<1x384xf32, #tpu.memory_space<vmem>>, vector<1x384xf32>
    %87 = vector.broadcast %86 : vector<1x384xf32> to vector<16x384xf32>
    %88 = arith.addf %85, %87 : vector<16x384xf32>
    %cst_37 = arith.constant 0.000000e+00 : f32
    %89 = vector.broadcast %cst_37 : f32 to vector<16x384xf32>
    %90 = arith.maximumf %88, %89 : vector<16x384xf32>
    %c0_38 = arith.constant 0 : index
    %c0_39 = arith.constant 0 : index
    %91 = vector.load %arg7[%c0_38, %c0_39] : memref<384x128xbf16, #tpu.memory_space<vmem>>, vector<384x128xbf16>
    %92 = arith.extf %91 : vector<384x128xbf16> to vector<384x128xf32>
    %cst_40 = arith.constant dense<0.000000e+00> : vector<16x128xf32>
    %93 = tpu.matmul %90, %92, %cst_40 {dimension_numbers = #tpu.dot_dimension_numbers<[1], [0], [0], [1], [0, 0, 1, 1], [], []>} : vector<16x384xf32>, vector<384x128xf32>, vector<16x128xf32> -> vector<16x128xf32>
    %c0_41 = arith.constant 0 : index
    %c0_42 = arith.constant 0 : index
    %94 = vector.load %arg8[%c0_41, %c0_42] : memref<1x128xf32, #tpu.memory_space<vmem>>, vector<1x128xf32>
    %95 = vector.broadcast %94 : vector<1x128xf32> to vector<16x128xf32>
    %96 = arith.addf %93, %95 : vector<16x128xf32>
    %97 = arith.addf %64, %96 : vector<16x128xf32>
    %98 = vector.shape_cast %97 : vector<16x128xf32> to vector<2x8x128xf32>
    %c0_43 = arith.constant 0 : index
    %c0_44 = arith.constant 0 : index
    %c0_45 = arith.constant 0 : index
    %99 = vector.load %arg12[%c0_43, %c0_44, %c0_45] : memref<2x8x128xf32, #tpu.memory_space<vmem>>, vector<2x8x128xf32>
    tpu.vector_store %arg12[%c0_43, %c0_44, %c0_45], %98 {strides = array<i32>} : memref<2x8x128xf32, #tpu.memory_space<vmem>>, vector<2x8x128xf32>,
    return
  }
}

</mosaic_0001>

<bundles_post_ra>
// kernel: transformer_block.1
= control target key start
LH: loop header
LB: loop body
LE: loop exit
PB: predicated region body
PF: predicated region fallthrough
CT: control target
= control target key end

     0   :  { %17 = vsyncpa [#allocation3], 0  ;;  %s2486_s0 = inlined_call_operand.vmem [shape: f32[2,8,128], index: 0, kind: input, shape index: {}]   ;;  %s2487_s1 = inlined_call_operand.hbm [shape: bf16[128,384], index: 1, kind: input, shape index: {}]   ;;  %s2488_s2 = inlined_call_operand.vmem [shape: f32[1,384], index: 2, kind: input, shape index: {}]   ;;  %s2489_s3 = inlined_call_operand.hbm [shape: bf16[128,128], index: 3, kind: input, shape index: {}]   ;;  %s2490_s4 = inlined_call_operand.vmem [shape: f32[1,128], index: 4, kind: input, shape index: {}]   ;;  %s2491_s5 = inlined_call_operand.hbm [shape: bf16[128,384], index: 5, kind: input, shape index: {}]   ;;  %s2492_s6 = inlined_call_operand.vmem [shape: f32[1,384], index: 6, kind: input, shape index: {}]   ;;  %s2493_s7 = inlined_call_operand.hbm [shape: bf16[384,128], index: 7, kind: input, shape index: {}]   ;;  %s2494_s8 = inlined_call_operand.vmem [shape: f32[1,128], index: 8, kind: input, shape index: {}]   ;;  %s2495_s9 = inlined_call_operand.hbm [shape: f32[48,128], index: 9, kind: input, shape index: {}]   ;;  %s2496_s10 = inlined_call_operand.hbm [shape: f32[48,48], index: 10, kind: input, shape index: {}]   ;;  %s2497_s11 = inlined_call_operand.vmem [shape: f32[1,8,48], index: 11, kind: input, shape index: {}]   ;;  %s2498_s12 = inlined_call_operand.hbm [shape: f32[2,8,128], index: 12, kind: output, shape index: {}]  }
   0x1   :  { %18 = vsyncpa [#allocation6], 0 }
   0x2   :  { %19 = vsyncpa [#allocation9], 0 }
   0x3   :  { %20 = vsyncpa [#allocation12], 0 }
   0x4   :  { %21 = vsyncpa [#allocation4], 0  ;;  %s2202_s21 = smov [#allocation5]  }
   0x5   :  { %s43_s22 = sshll.u32 %s2202_s21, 4  ;;  %s44_s22 = int_to_ptr.vmem [resolvable:$true] %s43_s22 }
   0x6   :  { %s2060_s23 = scalar_lea.vmem %s44_s22, 1024  ;;  %p2065_p1 = scmp.lt.s32.totalorder %s44_s22, %s44_s22 }
   0x7   :  { %p2061_p0 = scmp.ne.s32.totalorder %s44_s22, %s2060_s23  ;;  %p2066_p2 = scmp.lt.s32.totalorder %s2060_s23, %s2060_s23 }
   0x9   :  { %p2067_p3 = por %p2066_p2, %p2065_p1 }
   0xb   :  { %p2068_p4 = pnand %p2067_p3, %p2061_p0 }
   0xd   :  { %2071 = shalt.err (!%p2068_p4)
}
   0xe   :  { %s2203_s24 = smov 64   ;;  %s2204_s25 = smov 4  }
   0xf   :  { %49 = dma.hbm_to_vmem [thread:$0]  %s2489_s3, 1024, %s44_s22, [#allocation6], %s2203_s24, %s2203_s24, %s2204_s25  }
  0x10   :  { %s2205_s28 = smov [#allocation8]   ;;  %s2206_s30 = smov [#allocation2]  }
  0x11   :  { %s71_s29 = sshll.u32 %s2205_s28, 4  ;;  %s29_s13 = sshll.u32 %s2206_s30, 4  ;;  %s72_s29 = int_to_ptr.vmem [resolvable:$true] %s71_s29  ;;  %s30_s13 = int_to_ptr.vmem [resolvable:$true] %s29_s13 }
  0x12   :  { %s2080_s14 = scalar_lea.vmem %s72_s29, 3072  ;;  %p2085_p6 = scmp.lt.s32.totalorder %s72_s29, %s72_s29 }
  0x13   :  { %p2081_p5 = scmp.ne.s32.totalorder %s72_s29, %s2080_s14  ;;  %p2086_p7 = scmp.lt.s32.totalorder %s2080_s14, %s2080_s14 }
  0x15   :  { %p2087_p8 = por %p2086_p7, %p2085_p6 }
  0x17   :  { %p2088_p9 = pnand %p2087_p8, %p2081_p5 }
  0x19   :  { %2091 = shalt.err (!%p2088_p9)
}
  0x1a   :  { %77 = dma.hbm_to_vmem [thread:$0]  %s2493_s7, 3072, %s72_s29, [#allocation9], %s2203_s24, %s2203_s24, %s2204_s25  }
  0x1b   :  { %s2100_s17 = scalar_lea.vmem %s30_s13, 3072  ;;  %p2105_p11 = scmp.lt.s32.totalorder %s30_s13, %s30_s13 }
  0x1c   :  { %p2101_p10 = scmp.ne.s32.totalorder %s30_s13, %s2100_s17  ;;  %p2106_p12 = scmp.lt.s32.totalorder %s2100_s17, %s2100_s17 }
  0x1e   :  { %p2107_p13 = por %p2106_p12, %p2105_p11 }
  0x20   :  { %p2108_p0 = pnand %p2107_p13, %p2101_p10 }
  0x22   :  { %2111 = shalt.err (!%p2108_p0)
}
  0x23   :  { %s2207_s3 = smov 192   ;;  %s2208_s18 = smov 12  }
  0x24   :  { %35 = dma.hbm_to_vmem [thread:$0]  %s2487_s1, 3072, %s30_s13, [#allocation3], %s2207_s3, %s2207_s3, %s2208_s18  }
  0x25   :  { %s2209_s21 = smov [#allocation7]   ;;  %s2210_s23 = smov [#allocation10]  }
  0x26   :  { %s57_s22 = sshll.u32 %s2209_s21, 4  ;;  %s85_s26 = sshll.u32 %s2210_s23, 4  ;;  %s58_s22 = int_to_ptr.vmem [resolvable:$true] %s57_s22  ;;  %s86_s26 = int_to_ptr.vmem [resolvable:$true] %s85_s26 }
  0x27   :  { %s2120_s7 = scalar_lea.vmem %s58_s22, 3072  ;;  %p2125_p2 = scmp.lt.s32.totalorder %s58_s22, %s58_s22 }
  0x28   :  { %p2121_p1 = scmp.ne.s32.totalorder %s58_s22, %s2120_s7  ;;  %p2126_p3 = scmp.lt.s32.totalorder %s2120_s7, %s2120_s7 }
  0x2a   :  { %p2127_p4 = por %p2126_p3, %p2125_p2 }
  0x2c   :  { %p2128_p5 = pnand %p2127_p4, %p2121_p1 }
  0x2e   :  { %2131 = shalt.err (!%p2128_p5)
}
  0x2f   :  { %63 = dma.hbm_to_vmem [thread:$0]  %s2491_s5, 3072, %s58_s22, [#allocation6], %s2207_s3, %s2207_s3, %s2208_s18  }
  0x30   :  { %s2140_s27 = scalar_lea.vmem %s86_s26, 768  ;;  %p2145_p7 = scmp.lt.s32.totalorder %s86_s26, %s86_s26 }
  0x31   :  { %p2141_p6 = scmp.ne.s32.totalorder %s86_s26, %s2140_s27  ;;  %p2146_p8 = scmp.lt.s32.totalorder %s2140_s27, %s2140_s27 }
  0x33   :  { %p2147_p9 = por %p2146_p8, %p2145_p7 }
  0x35   :  { %p2148_p10 = pnand %p2147_p9, %p2141_p6 }
  0x37   :  { %2151 = shalt.err (!%p2148_p10)
}
  0x38   :  { %s2211_s1 = smov 128   ;;  %s2212_s28 = smov 8  }
  0x39   :  { %91 = dma.hbm_to_vmem [thread:$0]  %s2495_s9, 768, %s86_s26, [#allocation9], %s2211_s1, %s2211_s1, %s2212_s28  }
  0x3a   :  { %s2213_s13 = smov [#allocation11]  }
  0x3b   :  { %s97_s14 = sshll.u32 %s2213_s13, 4  ;;  %s98_s14 = int_to_ptr.vmem [resolvable:$true] %s97_s14 }
  0x3c   :  { %s2160_s5 = scalar_lea.vmem %s98_s14, 768  ;;  %p2165_p12 = scmp.lt.s32.totalorder %s98_s14, %s98_s14 }
  0x3d   :  { %p2161_p11 = scmp.ne.s32.totalorder %s98_s14, %s2160_s5  ;;  %p2166_p13 = scmp.lt.s32.totalorder %s2160_s5, %s2160_s5 }
  0x3f   :  { %p2167_p0 = por %p2166_p13, %p2165_p12 }
  0x41   :  { %p2168_p1 = pnand %p2167_p0, %p2161_p11 }
  0x43   :  { %2171 = shalt.err (!%p2168_p1)
}
  0x44   :  { %103 = dma.hbm_to_vmem [thread:$0]  %s2496_s10, 768, %s98_s14, [#allocation12], %s2211_s1, %s2211_s1, %s2212_s28  }
  0x45   :  { %2192 = dma.done.wait [#allocation3], 3072  }
  0x46   :  { %2193 = vsyncadd [#allocation3], 4294964224 }
  0x47   :  { %2194 = dma.done.wait [#allocation6], 4096  }
  0x48   :  { %2195 = vsyncadd [#allocation6], 4294963200 }
  0x49   :  { %2196 = dma.done.wait [#allocation9], 3840  }
  0x4a   :  { %2197 = vsyncadd [#allocation9], 4294963456 }
  0x4b   :  { %2198 = dma.done.wait [#allocation12], 768  }
  0x4c   :  { %2199 = vsyncadd [#allocation12], 4294966528  ;;  %v2309_v0 = vld [vmem:[%s2486_s0 + $0x8] sm:$0xff]  ;;  %v2314_v1 = vld [vmem:[%s2486_s0] sm:$0xff]  ;;  %vm2215_vm0 = vmmov 0   ;;  %vm572_vm1 = vcmask 392192  }
  0x4d   :  { %v182_v2 = vld [vmem:[#allocation2 + $0xb4] sm:$0xff]  ;;  %128 = vadd.xlane.f32.xlu1 %v2309_v0  ;;  %126 = vadd.xlane.f32.xlu0 %v2314_v1  ;;  %v133_v3 = vmul.f32 %v2309_v0, %v2309_v0  ;;  %v132_v4 = vmul.f32 %v2314_v1, %v2314_v1  ;;  %v183_v7 = vld [vmem:[#allocation2 + $0xb0] ss:$12 sps:$4 sm:$0xff]   ;;  %v180_v8 = vld [vmem:[#allocation2 + $0xa8] sm:$0xff]  ;;  %s2216_s23 = smov [#allocation13]  }
  0x4e   :  { %v230_v5 = vunpack.c.h.bf16 %v182_v2  ;;  %v229_v6 = vunpack.c.l.bf16 %v182_v2  ;;  %v178_v9 = vld [vmem:[#allocation2 + $0x9c] sm:$0xff]  ;;  %v231_v10 = vunpack.c.h.bf16 %v183_v7  ;;  %v227_v11 = vunpack.c.h.bf16 %v180_v8  ;;  %v179_v12 = vld [vmem:[#allocation2 + $0x98] ss:$12 sps:$4 sm:$0xff]   ;;  %v176_v18 = vld [vmem:[#allocation2 + $0x90] sm:$0xff]  ;;  %s1481_s26 = sshll.u32 %s2216_s23, 4  ;;  %s1482_s26 = int_to_ptr.vmem [resolvable:$true] %s1481_s26 }
  0x4f   :  { %v226_v13 = vunpack.c.l.bf16 %v180_v8  ;;  %v228_v14 = vunpack.c.l.bf16 %v183_v7  ;;  %v224_v15 = vunpack.c.h.bf16 %v178_v9  ;;  %v223_v16 = vunpack.c.l.bf16 %v178_v9  ;;  %v174_v22 = vld [vmem:[#allocation2 + $0x84] sm:$0xff]  ;;  %v175_v24 = vld [vmem:[#allocation2 + $0x80] ss:$12 sps:$4 sm:$0xff]   ;;  %v172_v27 = vld [vmem:[#allocation2 + $0x78] sm:$0xff]  ;;  %p2177_p3 = scmp.lt.s32.totalorder %s1482_s26, %s1482_s26 }
  0x50   :  { %249 = vmatprep.subr.mxu0 %v230_v5  ;;  %1806 = vmatprep.subr.mxu1 %v231_v10  ;;  %v225_v17 = vunpack.c.h.bf16 %v179_v12  ;;  %v221_v19 = vunpack.c.h.bf16 %v176_v18  ;;  %v220_v20 = vunpack.c.l.bf16 %v176_v18  ;;  %v222_v21 = vunpack.c.l.bf16 %v179_v12  ;;  %v170_v31 = vld [vmem:[#allocation2 + $0x6c] sm:$0xff]  ;;  %v171_v33 = vld [vmem:[#allocation2 + $0x68] ss:$12 sps:$4 sm:$0xff]   ;;  %v168_v36 = vld [vmem:[#allocation2 + $0x60] sm:$0xff] }
  0x51   :  { %250 = vmatpush1.msra.mxu0 %v229_v6  ;;  %136 = vadd.xlane.f32.xlu1 %v133_v3  ;;  %v218_v23 = vunpack.c.h.bf16 %v174_v22  ;;  %v217_v25 = vunpack.c.l.bf16 %v174_v22  ;;  %v219_v26 = vunpack.c.h.bf16 %v175_v24  ;;  %v215_v28 = vunpack.c.h.bf16 %v172_v27  ;;  %v166_v40 = vld [vmem:[#allocation2 + $0x54] sm:$0xff]  ;;  %v167_v42 = vld [vmem:[#allocation2 + $0x50] ss:$12 sps:$4 sm:$0xff]   ;;  %v164_v45 = vld [vmem:[#allocation2 + $0x48] sm:$0xff] }
  0x52   :  { %134 = vadd.xlane.f32.xlu0 %v132_v4  ;;  %251 = vmatprep.subr.mxu0 %v227_v11  ;;  %v214_v29 = vunpack.c.l.bf16 %v172_v27  ;;  %v216_v30 = vunpack.c.l.bf16 %v175_v24  ;;  %v212_v32 = vunpack.c.h.bf16 %v170_v31  ;;  %v211_v34 = vunpack.c.l.bf16 %v170_v31  ;;  %v162_v49 = vld [vmem:[#allocation2 + $0x3c] sm:$0xff]  ;;  %v163_v50 = vld [vmem:[#allocation2 + $0x38] ss:$12 sps:$4 sm:$0xff]   ;;  %v160_v51 = vld [vmem:[#allocation2 + $0x30] sm:$0xff] }
  0x53   :  { %1807 = vmatpush3.msra.mxu1 %v231_v10  ;;  %252 = vmatpush1.msra.mxu0 %v226_v13  ;;  %v213_v35 = vunpack.c.h.bf16 %v171_v33  ;;  %v209_v37 = vunpack.c.h.bf16 %v168_v36  ;;  %v208_v38 = vunpack.c.l.bf16 %v168_v36  ;;  %v210_v39 = vunpack.c.l.bf16 %v171_v33  ;;  %v158_v55 = vld [vmem:[#allocation2 + $0x24] sm:$0xff]  ;;  %v159_v57 = vld [vmem:[#allocation2 + $0x20] ss:$12 sps:$4 sm:$0xff]   ;;  %v156_v60 = vld [vmem:[#allocation2 + $0x18] sm:$0xff] }
  0x54   :  { %1808 = vmatprep.subr.mxu1 %v228_v14  ;;  %253 = vmatprep.subr.mxu0 %v224_v15  ;;  %v206_v41 = vunpack.c.h.bf16 %v166_v40  ;;  %v205_v43 = vunpack.c.l.bf16 %v166_v40  ;;  %v207_v44 = vunpack.c.h.bf16 %v167_v42  ;;  %v203_v46 = vunpack.c.h.bf16 %v164_v45  ;;  %v154_v2 = vld [vmem:[#allocation2 + $0xc] sm:$0xff]  ;;  %v155_v4 = vld [vmem:[#allocation2 + $0x8] ss:$12 sps:$4 sm:$0xff]   ;;  %v152_v7 = vld [vmem:[#allocation2] sm:$0xff] }
  0x55   :  { %1809 = vmatpush3.msra.mxu1 %v228_v14  ;;  %254 = vmatpush1.msra.mxu0 %v223_v16  ;;  %v202_v47 = vunpack.c.l.bf16 %v164_v45  ;;  %v204_v48 = vunpack.c.l.bf16 %v167_v42  ;;  %v200_v52 = vunpack.c.h.bf16 %v162_v49  ;;  %v199_v53 = vunpack.c.l.bf16 %v162_v49  ;;  %v2347_v45 = vld [vmem:[#allocation10 + $0x20] sm:$0xff] }
  0x56   :  { %1810 = vmatprep.subr.mxu1 %v225_v17  ;;  %255 = vmatprep.subr.mxu0 %v221_v19  ;;  %v201_v54 = vunpack.c.h.bf16 %v163_v50  ;;  %v197_v56 = vunpack.c.h.bf16 %v160_v51  ;;  %v196_v58 = vunpack.c.l.bf16 %v160_v51  ;;  %v198_v59 = vunpack.c.l.bf16 %v163_v50 }
  0x57   :  { %1811 = vmatpush3.msra.mxu1 %v225_v17  ;;  %256 = vmatpush1.msra.mxu0 %v220_v20  ;;  %v194_v61 = vunpack.c.h.bf16 %v158_v55  ;;  %v193_v62 = vunpack.c.l.bf16 %v158_v55  ;;  %v195_v63 = vunpack.c.h.bf16 %v159_v57  ;;  %v191_v3 = vunpack.c.h.bf16 %v156_v60  ;;  %v2362_v55 = vld [vmem:[#allocation10 + $0x10] sm:$0xff] }
  0x58   :  { %1812 = vmatprep.subr.mxu1 %v222_v21  ;;  %257 = vmatprep.subr.mxu0 %v218_v23  ;;  %v190_v5 = vunpack.c.l.bf16 %v156_v60  ;;  %v192_v6 = vunpack.c.l.bf16 %v159_v57  ;;  %v188_v8 = vunpack.c.h.bf16 %v154_v2  ;;  %v187_v9 = vunpack.c.l.bf16 %v154_v2 }
  0x59   :  { %1813 = vmatpush3.msra.mxu1 %v222_v21  ;;  %258 = vmatpush1.msra.mxu0 %v217_v25  ;;  %v189_v10 = vunpack.c.h.bf16 %v155_v4  ;;  %v185_v11 = vunpack.c.h.bf16 %v152_v7  ;;  %v184_v12 = vunpack.c.l.bf16 %v152_v7  ;;  %v186_v13 = vunpack.c.l.bf16 %v155_v4 }
  0x5a   :  { %1814 = vmatprep.subr.mxu1 %v219_v26  ;;  %259 = vmatprep.subr.mxu0 %v215_v28  ;;  %v2214_v14 = vmov 0.0  }
  0x5b   :  { %1815 = vmatpush3.msra.mxu1 %v219_v26  ;;  %260 = vmatpush1.msra.mxu0 %v214_v29 }
  0x5c   :  { %1816 = vmatprep.subr.mxu1 %v216_v30  ;;  %261 = vmatprep.subr.mxu0 %v212_v32 }
  0x5d   :  { %1817 = vmatpush3.msra.mxu1 %v216_v30  ;;  %262 = vmatpush1.msra.mxu0 %v211_v34 }
  0x5e   :  { %1818 = vmatprep.subr.mxu1 %v213_v35  ;;  %263 = vmatprep.subr.mxu0 %v209_v37 }
  0x5f   :  { %1819 = vmatpush3.msra.mxu1 %v213_v35  ;;  %264 = vmatpush1.msra.mxu0 %v208_v38  ;;  %v234_v35 = vlaneseq  ;;  %v232_v38 = vld [vmem:[%s2488_s2] sm:$0x7] }
  0x60   :  { %1820 = vmatprep.subr.mxu1 %v210_v39  ;;  %265 = vmatprep.subr.mxu0 %v206_v41 }
  0x61   :  { %1821 = vmatpush3.msra.mxu1 %v210_v39  ;;  %266 = vmatpush1.msra.mxu0 %v205_v43  ;;  %v2332_v36 = vshrl.u32 %v234_v35, 7 }
  0x62   :  { %1822 = vmatprep.subr.mxu1 %v207_v44  ;;  %267 = vmatprep.subr.mxu0 %v203_v46  ;;  %v2349_v46 = vld [vmem:[#allocation10 + $0x18] sm:$0xff] }
  0x63   :  { %1823 = vmatpush3.msra.mxu1 %v207_v44  ;;  %268 = vmatpush1.msra.mxu0 %v202_v47  ;;  %v244_v37 = vsub.s32 2, %v2332_v36  ;;  %v240_v39 = vsub.s32 1, %v2332_v36  ;;  %v2345_v44 = vld [vmem:[#allocation10 + $0x28] sm:$0xff]  ;;  %v236_v7 = vsub.s32 0, %v2332_v36 }
  0x64   :  { %1824 = vmatprep.subr.mxu1 %v204_v48  ;;  %269 = vmatprep.subr.mxu0 %v200_v52 }
  0x65   :  { %1825 = vmatpush3.msra.mxu1 %v204_v48  ;;  %270 = vmatpush1.msra.mxu0 %v199_v53  ;;  %v2341_v40 = vrot.slane %v232_v38, %v244_v37  ;;  %v241_v41 = vrot.slane %v232_v38, %v240_v39 }
  0x66   :  { %1826 = vmatprep.subr.mxu1 %v201_v54  ;;  %271 = vmatprep.subr.mxu0 %v197_v56  ;;  %v2364_v56 = vld [vmem:[#allocation10 + $0x8] sm:$0xff] }
  0x67   :  { %1827 = vmatpush3.msra.mxu1 %v201_v54  ;;  %272 = vmatpush1.msra.mxu0 %v196_v58 }
  0x68   :  { %1828 = vmatprep.subr.mxu1 %v198_v59  ;;  %273 = vmatprep.subr.mxu0 %v194_v61 }
  0x69   :  { %1829 = vmatpush3.msra.mxu1 %v198_v59  ;;  %274 = vmatpush1.msra.mxu0 %v193_v62  ;;  %v2366_v59 = vld [vmem:[#allocation10] sm:$0xff] }
  0x6a   :  { %1830 = vmatprep.subr.mxu1 %v195_v63  ;;  %275 = vmatprep.subr.mxu0 %v191_v3 }
  0x6b   :  { %1831 = vmatpush3.msra.mxu1 %v195_v63  ;;  %276 = vmatpush1.msra.mxu0 %v190_v5 }
  0x6c   :  { %1832 = vmatprep.subr.mxu1 %v192_v6  ;;  %277 = vmatprep.subr.mxu0 %v188_v8 }
  0x6d   :  { %1833 = vmatpush3.msra.mxu1 %v192_v6  ;;  %278 = vmatpush1.msra.mxu0 %v187_v9 }
  0x6e   :  { %1834 = vmatprep.subr.mxu1 %v189_v10  ;;  %279 = vmatprep.subr.mxu0 %v185_v11 }
  0x6f   :  { %1835 = vmatpush3.msra.mxu1 %v189_v10  ;;  %280 = vmatpush1.msra.mxu0 %v184_v12  ;;  %v237_v10 = vrot.slane %v232_v38, %v236_v7 }
  0x70   :  { %313 = vmatprep.mubr.f32.mxu0 %v2214_v14  ;;  %1836 = vmatprep.subr.mxu1 %v186_v13 }
  0x71   :  { %1841 = vmatprep.subr.mxu0 %v2214_v14  ;;  %1837 = vmatpush3.msra.mxu1 %v186_v13 }
  0x72   :  { %1856 = vmatprep.subr.mxu1 %v2214_v14 }
  0xd6   :  { %v129_v15 = vpop.xlane.xlu1 %128  ;;  %v127_v16 = vpop.xlane.xlu0 %126 }
  0xd7   :  { %v131_v17 = vmul.f32 0.013888889, %v129_v15  ;;  %v130_v18 = vmul.f32 0.013888889, %v127_v16 }
  0xd9   :  { %v141_v19 = vmul.f32 %v131_v17, %v131_v17  ;;  %v140_v22 = vmul.f32 %v130_v18, %v130_v18  ;;  %v145_v29 = vsub.f32 %v2309_v0, %v131_v17  ;;  %v144_v31 = vsub.f32 %v2314_v1, %v130_v18  ;;  %v431_v17 = vld [vmem:[%s2497_s11] sm:$0xff] }
  0xda   :  { %v137_v20 = vpop.xlane.xlu1 %136 }
  0xdb   :  { %v135_v21 = vpop.xlane.xlu0 %134  ;;  %v139_v23 = vmul.f32 0.013888889, %v137_v20 }
  0xdc   :  { %v138_v24 = vmul.f32 0.013888889, %v135_v21 }
  0xdd   :  { %v143_v25 = vsub.f32 %v139_v23, %v141_v19 }
  0xde   :  { %v142_v26 = vsub.f32 %v138_v24, %v140_v22 }
  0xdf   :  { %v147_v27 = vadd.f32 1e-05, %v143_v25 }
  0xe0   :  { %v146_v28 = vadd.f32 1e-05, %v142_v26 }
  0xe1   :  { %2036 = vrsqrt.f32 %v147_v27  ;;  %v590_v27 = vld [vmem:[#allocation11 + $0x28] sm:$0xff] }
  0xe2   :  { %2038 = vrsqrt.f32 %v146_v28  ;;  %v589_v28 = vld [vmem:[#allocation11 + $0x20] sm:$0xff] }
  0xee   :  { %v2037_v30 = vpop.eup %2036 }
  0xef   :  { %v2039_v32 = vpop.eup %2038  ;;  %v151_v33 = vmul.f32 %v2037_v30, %v145_v29  ;;  %v588_v29 = vld [vmem:[#allocation11 + $0x18] sm:$0xff]  ;;  %v587_v30 = vld [vmem:[#allocation11 + $0x10] sm:$0xff] }
  0xf0   :  { %v150_v34 = vmul.f32 %v2039_v32, %v144_v31  ;;  %v586_v31 = vld [vmem:[#allocation11 + $0x8] sm:$0xff]  ;;  %v585_v32 = vld [vmem:[#allocation11] sm:$0xff] }
  0xf2   :  { %314 = vmatmul.mubr.f32.vlgmr.msra.gmra.mxu0 %v150_v34  ;;  %1838 = vmatprep.mubr.f32.mxu1 %v150_v34 }
  0xf3   :  { %1839 = vmatmul.mubr.f32.vlgmr.msra.gmra.mxu1 %v151_v33  ;;  %319 = vmatprep.mubr.f32.mxu0 %v2214_v14 }
  0xf4   :  { %1868 = vmatprep.mubr.msk.f32.mxu1 %vm2215_vm0, %v2214_v14 }
  0xf6   :  { %320 = vmatmul.mubr.f32.gmra.mxu0 %v151_v33 }
  0xf7   :  { %1853 = vmatprep.mubr.msk.f32.mxu0 %vm2215_vm0, %v2214_v14 }
 0x1b2   :  { %v315_v42 = vpop.f32.mrf.mxu0 }
 0x1b3   :  { %v1840_v43 = vpop.f32.mrf.mxu1  ;;  %v316_v13 = vadd.f32 %v315_v42, %v237_v10 }
 0x1b4   :  { %v398_v47 = vadd.f32 %v1840_v43, %v2341_v40  ;;  %v317_v48 = vpop.f32.mrf.mxu0 }
 0x1b5   :  { %v318_v49 = vadd.f32 %v317_v48, %v241_v41  ;;  %v392_v20 = vpop.f32.mrf.mxu1 }
 0x1b6   :  { %v321_v50 = vpop.f32.mrf.mxu0  ;;  %v2353_v51 = vmul.f32 %v2345_v44, %v398_v47  ;;  %v2356_v52 = vmul.f32 %v2347_v45, %v398_v47  ;;  %v2359_v53 = vmul.f32 %v2349_v46, %v398_v47  ;;  %v2370_v60 = vmul.f32 %v2362_v55, %v398_v47 }
 0x1b7   :  { %v412_v54 = vmul.f32 %v2345_v44, %v318_v49  ;;  %v2373_v61 = vmul.f32 %v2364_v56, %v398_v47  ;;  %v411_v62 = vmul.f32 %v2347_v45, %v318_v49  ;;  %v2378_v2 = vmul.f32 %v2366_v59, %v398_v47 }
 0x1b8   :  { %v323_v57 = vpop.f32.mrf.mxu0  ;;  %v410_v3 = vmul.f32 %v2349_v46, %v318_v49  ;;  %v409_v5 = vmul.f32 %v2362_v55, %v318_v49  ;;  %v408_v8 = vmul.f32 %v2364_v56, %v318_v49  ;;  %v407_v11 = vmul.f32 %v2366_v59, %v318_v49 }
 0x1b9   :  { %v324_v58 = vadd.f32 %v323_v57, %v241_v41  ;;  %1842 = vmatpush3.xpose.msra.mxu0 %v412_v54  ;;  %v322_v16 = vadd.f32 %v321_v50, %v237_v10  ;;  %v393_v47 = vadd.f32 %v392_v20, %v2341_v40  ;;  %v1635_v57 = vld [vmem:[#allocation5 + $0x30] sm:$0xff]  }
 0x1ba   :  { %1843 = vmatprep.subr.mxu0 %v2214_v14 }
 0x1bb   :  { %v418_v63 = vmul.f32 %v2345_v44, %v324_v58  ;;  %v417_v4 = vmul.f32 %v2347_v45, %v324_v58  ;;  %v416_v6 = vmul.f32 %v2349_v46, %v324_v58  ;;  %v415_v9 = vmul.f32 %v2362_v55, %v324_v58 }
 0x1bc   :  { %v414_v12 = vmul.f32 %v2364_v56, %v324_v58  ;;  %v413_v15 = vmul.f32 %v2366_v59, %v324_v58  ;;  %v424_v49 = vmul.f32 %v2345_v44, %v393_v47  ;;  %v423_v50 = vmul.f32 %v2347_v45, %v393_v47 }
 0x1bd   :  { %1844 = vmatpush3.xpose.msra.mxu0 %v411_v62  ;;  %1857 = vmatpush3.xpose.msra.mxu1 %v418_v63  ;;  %v422_v40 = vmul.f32 %v2349_v46, %v393_v47  ;;  %v421_v54 = vmul.f32 %v2362_v55, %v393_v47  ;;  %v420_v44 = vmul.f32 %v2364_v56, %v393_v47  ;;  %v1636_v46 = vld [vmem:[#allocation5 + $0x38] sm:$0xff]   ;;  %v1529_v55 = vunpack.c.h.bf16 %v1635_v57  ;;  %v1634_v63 = vld [vmem:[#allocation5 + $0x28] sm:$0xff]  }
 0x1be   :  { %1845 = vmatprep.subr.mxu0 %v2214_v14  ;;  %1858 = vmatprep.subr.mxu1 %v2214_v14  ;;  %v419_v45 = vmul.f32 %v2366_v59, %v393_v47  ;;  %v1533_v58 = vunpack.c.h.bf16 %v1636_v46  ;;  %v1532_v62 = vunpack.c.l.bf16 %v1636_v46  ;;  %v1528_v56 = vunpack.c.l.bf16 %v1635_v57  ;;  %v1633_v59 = vld [vmem:[#allocation5 + $0x20] sm:$0xff]  }
 0x1bf   :  { %v986_v57 = vld [vmem:[#allocation7 + $0x84] sm:$0xff] }
 0x1c1   :  { %1846 = vmatpush3.xpose.msra.mxu0 %v410_v3  ;;  %1859 = vmatpush3.xpose.msra.mxu1 %v417_v4  ;;  %v1525_v3 = vunpack.c.h.bf16 %v1634_v63  ;;  %v1524_v4 = vunpack.c.l.bf16 %v1634_v63  ;;  %v984_v63 = vld [vmem:[#allocation7 + $0x78] sm:$0xff] }
 0x1c2   :  { %1847 = vmatprep.subr.mxu0 %v2214_v14  ;;  %1860 = vmatprep.subr.mxu1 %v2214_v14 }
 0x1c5   :  { %1848 = vmatpush3.xpose.msra.mxu0 %v409_v5  ;;  %1861 = vmatpush3.xpose.msra.mxu1 %v416_v6  ;;  %v1521_v5 = vunpack.c.h.bf16 %v1633_v59  ;;  %v1632_v6 = vld [vmem:[#allocation5 + $0x18] sm:$0xff]  }
 0x1c6   :  { %1849 = vmatprep.subr.mxu0 %v2214_v14  ;;  %1862 = vmatprep.subr.mxu1 %v2214_v14  ;;  %v1516_v10 = vunpack.c.l.bf16 %v1632_v6 }
 0x1c9   :  { %1850 = vmatpush3.xpose.msra.mxu0 %v408_v8  ;;  %1863 = vmatpush3.xpose.msra.mxu1 %v415_v9  ;;  %v1520_v8 = vunpack.c.l.bf16 %v1633_v59  ;;  %v1517_v9 = vunpack.c.h.bf16 %v1632_v6  ;;  %v982_v59 = vld [vmem:[#allocation7 + $0x6c] sm:$0xff] }
 0x1ca   :  { %1851 = vmatprep.subr.mxu0 %v2214_v14  ;;  %1864 = vmatprep.subr.mxu1 %v2214_v14 }
 0x1cd   :  { %1852 = vmatpush3.xpose.msra.mxu0 %v407_v11  ;;  %1865 = vmatpush3.xpose.msra.mxu1 %v414_v12 }
 0x1ce   :  { %1866 = vmatprep.subr.mxu1 %v2214_v14  ;;  %1871 = vmatprep.subr.mxu0 %v590_v27 }
 0x1d0   :  { %1854 = vmatmul.mubr.f32.vlgmr.msra.gmra.mxu0 %v316_v13 }
 0x1d1   :  { %1867 = vmatpush3.xpose.msra.mxu1 %v413_v15  ;;  %1872 = vmatpush3.msra.mxu0 %v590_v27  ;;  %v990_v27 = vld [vmem:[#allocation7 + $0x9c] sm:$0xff] }
 0x1d2   :  { %1873 = vmatprep.subr.mxu0 %v589_v28  ;;  %1916 = vmatprep.subr.mxu1 %v1533_v58 }
 0x1d3   :  { %1874 = vmatpush3.msra.mxu0 %v589_v28 }
 0x1d4   :  { %1869 = vmatmul.mubr.f32.vlgmr.msra.gmra.mxu1 %v322_v16  ;;  %1875 = vmatprep.subr.mxu0 %v588_v29 }
 0x1d5   :  { %1876 = vmatpush3.msra.mxu0 %v588_v29  ;;  %1917 = vmatpush3.msra.mxu1 %v1533_v58  ;;  %v991_v58 = vld [vmem:[#allocation7 + $0x98] ss:$12 sps:$4 sm:$0xff]  }
 0x1d6   :  { %1877 = vmatprep.subr.mxu0 %v587_v30  ;;  %1918 = vmatprep.subr.mxu1 %v1532_v62 }
 0x1d7   :  { %1878 = vmatpush3.msra.mxu0 %v587_v30  ;;  %1919 = vmatpush3.msra.mxu1 %v1532_v62  ;;  %v1029_v62 = vunpack.c.l.bf16 %v986_v57 }
 0x1d8   :  { %1879 = vmatprep.subr.mxu0 %v586_v31  ;;  %1920 = vmatprep.subr.mxu1 %v1529_v55 }
 0x1d9   :  { %1880 = vmatpush3.msra.mxu0 %v586_v31  ;;  %1921 = vmatpush3.msra.mxu1 %v1529_v55  ;;  %v995_v31 = vld [vmem:[#allocation7 + $0xb0] ss:$12 sps:$4 sm:$0xff]   ;;  %v1037_v55 = vunpack.c.h.bf16 %v991_v58 }
 0x1da   :  { %1881 = vmatprep.subr.mxu0 %v585_v32  ;;  %1922 = vmatprep.subr.mxu1 %v1528_v56 }
 0x1db   :  { %1882 = vmatpush3.msra.mxu0 %v585_v32  ;;  %1923 = vmatpush3.msra.mxu1 %v1528_v56  ;;  %v1034_v56 = vunpack.c.l.bf16 %v991_v58 }
 0x1dc   :  { %1886 = vmatprep.subr.mxu0 %v2214_v14  ;;  %1924 = vmatprep.subr.mxu1 %v1525_v3 }
 0x1dd   :  { %1925 = vmatpush3.msra.mxu1 %v1525_v3  ;;  %v1026_v3 = vunpack.c.l.bf16 %v984_v63 }
 0x1de   :  { %1926 = vmatprep.subr.mxu1 %v1524_v4 }
 0x1df   :  { %1927 = vmatpush3.msra.mxu1 %v1524_v4  ;;  %v987_v4 = vld [vmem:[#allocation7 + $0x80] ss:$12 sps:$4 sm:$0xff]  }
 0x1e0   :  { %1928 = vmatprep.subr.mxu1 %v1521_v5  ;;  %v1031_v6 = vunpack.c.h.bf16 %v987_v4 }
 0x1e1   :  { %1929 = vmatpush3.msra.mxu1 %v1521_v5  ;;  %v1024_v5 = vunpack.c.h.bf16 %v982_v59 }
 0x1e2   :  { %1930 = vmatprep.subr.mxu1 %v1520_v8 }
 0x1e3   :  { %1931 = vmatpush3.msra.mxu1 %v1520_v8  ;;  %v1023_v8 = vunpack.c.l.bf16 %v982_v59 }
 0x1e4   :  { %1932 = vmatprep.subr.mxu1 %v1517_v9 }
 0x1e5   :  { %1933 = vmatpush3.msra.mxu1 %v1517_v9  ;;  %v980_v9 = vld [vmem:[#allocation7 + $0x60] sm:$0xff] }
 0x1e6   :  { %1934 = vmatprep.subr.mxu1 %v1516_v10 }
 0x1e7   :  { %1935 = vmatpush3.msra.mxu1 %v1516_v10  ;;  %v1021_v10 = vunpack.c.h.bf16 %v980_v9 }
 0x290   :  { %v498_v18 = vpop.f32.mrf.mxu0 }
 0x291   :  { %v499_v19 = vadd.f32 %v498_v18, %v431_v17  ;;  %v1630_v18 = vld [vmem:[#allocation5 + $0x8] sm:$0xff]  }
 0x292   :  { %v1855_v21 = vpop.f32.mrf.mxu0 }
 0x293   :  { %v573_v22 = vsel %vm572_vm1, %v499_v19, -inf }
 0x294   :  { %v568_v23 = vpop.f32.mrf.mxu1  ;;  %574 = vmax.xlane.f32.xlu0 %v573_v22 }
 0x295   :  { %v569_v24 = vadd.f32 %v568_v23, %v431_v17 }
 0x296   :  { %v1870_v25 = vpop.f32.mrf.mxu1 }
 0x297   :  { %v576_v26 = vsel %vm572_vm1, %v569_v24, -inf  ;;  %v994_v25 = vld [vmem:[#allocation7 + $0xb4] sm:$0xff] }
 0x298   :  { %577 = vmax.xlane.f32.xlu1 %v576_v26  ;;  %v992_v26 = vld [vmem:[#allocation7 + $0xa8] sm:$0xff]  ;;  %v1041_v28 = vunpack.c.l.bf16 %v994_v25  ;;  %v1042_v29 = vunpack.c.h.bf16 %v994_v25 }
 0x299   :  { %v1039_v30 = vunpack.c.h.bf16 %v992_v26  ;;  %v1038_v32 = vunpack.c.l.bf16 %v992_v26 }
 0x31d   :  { %v575_v33 = vpop.xlane.xlu0 %574 }
 0x31e   :  { %v579_v34 = vsub.f32 %v499_v19, %v575_v33  ;;  %v1503_v19 = vld [vmem:[#allocation5] sm:$0xff]   ;;  %v1043_v33 = vunpack.c.h.bf16 %v995_v31 }
 0x31f   :  { %v1505_v20 = vunpack.c.h.bf16 %v1503_v19 }
 0x320   :  { %v581_v35 = vmul.f32 1.442695, %v579_v34  ;;  %v988_v34 = vld [vmem:[#allocation7 + $0x90] sm:$0xff] }
 0x321   :  { %v578_v38 = vpop.xlane.xlu1 %577 }
 0x322   :  { %2040 = vpow2.f32 %v581_v35  ;;  %v580_v41 = vsub.f32 %v569_v24, %v578_v38  ;;  %v1036_v35 = vunpack.c.h.bf16 %v990_v27  ;;  %v1040_v38 = vunpack.c.l.bf16 %v995_v31 }
 0x324   :  { %v583_v42 = vmul.f32 1.442695, %v580_v41  ;;  %v1035_v41 = vunpack.c.l.bf16 %v990_v27 }
 0x326   :  { %2042 = vpow2.f32 %v583_v42  ;;  %v1033_v42 = vunpack.c.h.bf16 %v988_v34 }
 0x32f   :  { %v2407_v43 = vpop.eup %2040 }
 0x330   :  { %1883 = vmatprep.mubr.msk.f32.mxu0 %vm572_vm1, %v2407_v43 }
 0x333   :  { %v2412_v48 = vpop.eup %2042 }
 0x334   :  { %1884 = vmatmul.mubr.msk.f32.vlgmr.msra.gmra.mxu0 %vm572_vm1, %v2412_v48 }
 0x335   :  { %1887 = vmatpush3.msra.mxu0 %v424_v49  ;;  %1898 = vmatprep.mubr.msk.f32.mxu0 %vm2215_vm0, %v2214_v14 }
 0x336   :  { %1888 = vmatprep.subr.mxu0 %v2214_v14 }
 0x337   :  { %1889 = vmatpush3.msra.mxu0 %v423_v50 }
 0x338   :  { %1890 = vmatprep.subr.mxu0 %v2214_v14 }
 0x339   :  { %1891 = vmatpush3.msra.mxu0 %v422_v40 }
 0x33a   :  { %1892 = vmatprep.subr.mxu0 %v2214_v14 }
 0x33b   :  { %1893 = vmatpush3.msra.mxu0 %v421_v54 }
 0x33c   :  { %1894 = vmatprep.subr.mxu0 %v2214_v14 }
 0x33d   :  { %1895 = vmatpush3.msra.mxu0 %v420_v44 }
 0x33e   :  { %1896 = vmatprep.subr.mxu0 %v2214_v14 }
 0x33f   :  { %1897 = vmatpush3.msra.mxu0 %v419_v45 }
 0x340   :  { %1901 = vmatprep.subr.mxu0 %v2214_v14 }
 0x3f4   :  { %v1885_v11 = vpop.f32.mrf.mxu0 }
 0x3f6   :  { %v663_v12 = vpop.f32.mrf.mxu0 }
 0x3f7   :  { %2044 = vrcp.f32 %v663_v12  ;;  %v1020_v12 = vunpack.c.l.bf16 %v980_v9 }
 0x3f8   :  { %2046 = vrcp.f32 %v1885_v11  ;;  %v1028_v11 = vunpack.c.l.bf16 %v987_v4 }
 0x404   :  { %v2045_v13 = vpop.eup %2044 }
 0x405   :  { %v674_v15 = vmul.f32 %v2045_v13, %v2407_v43  ;;  %v2047_v16 = vpop.eup %2046  ;;  %v1032_v43 = vunpack.c.l.bf16 %v988_v34  ;;  %v978_v13 = vld [vmem:[#allocation7 + $0x54] sm:$0xff] }
 0x407   :  { %1899 = vmatmul.mubr.msk.f32.vlgmr.msra.gmra.mxu0 %vm572_vm1, %v674_v15  ;;  %v983_v15 = vld [vmem:[#allocation7 + $0x68] ss:$12 sps:$4 sm:$0xff]  }
 0x408   :  { %1902 = vmatpush3.msra.mxu0 %v2353_v51  ;;  %1913 = vmatprep.mubr.msk.f32.mxu0 %vm2215_vm0, %v2214_v14  ;;  %v675_v51 = vmul.f32 %v2047_v16, %v2412_v48  ;;  %v1500_v48 = vld [vmem:[%s2490_s4] ss:$0 sm:$0xff]  ;;  %v1018_v16 = vunpack.c.h.bf16 %v978_v13 }
 0x409   :  { %1903 = vmatprep.subr.mxu0 %v2214_v14 }
 0x40a   :  { %1904 = vmatpush3.msra.mxu0 %v2356_v52  ;;  %v1631_v52 = vld [vmem:[#allocation5 + $0x10] sm:$0xff]  }
 0x40b   :  { %1905 = vmatprep.subr.mxu0 %v2214_v14  ;;  %v1512_v17 = vunpack.c.l.bf16 %v1631_v52 }
 0x40c   :  { %1906 = vmatpush3.msra.mxu0 %v2359_v53  ;;  %v1513_v53 = vunpack.c.h.bf16 %v1631_v52  ;;  %v1017_v52 = vunpack.c.l.bf16 %v978_v13  ;;  %v1643_v13 = vld [vmem:[#allocation8 + $0x38] sm:$0xff]  }
 0x40d   :  { %1907 = vmatprep.subr.mxu0 %v2214_v14 }
 0x40e   :  { %1908 = vmatpush3.msra.mxu0 %v2370_v60  ;;  %1936 = vmatprep.subr.mxu1 %v1513_v53  ;;  %v1509_v60 = vunpack.c.h.bf16 %v1630_v18 }
 0x40f   :  { %1909 = vmatprep.subr.mxu0 %v2214_v14  ;;  %1937 = vmatpush3.msra.mxu1 %v1513_v53  ;;  %v976_v53 = vld [vmem:[#allocation7 + $0x48] sm:$0xff] }
 0x410   :  { %1910 = vmatpush3.msra.mxu0 %v2373_v61  ;;  %1938 = vmatprep.subr.mxu1 %v1512_v17  ;;  %v1508_v61 = vunpack.c.l.bf16 %v1630_v18  ;;  %v974_v18 = vld [vmem:[#allocation7 + $0x3c] sm:$0xff] }
 0x411   :  { %1911 = vmatprep.subr.mxu0 %v2214_v14  ;;  %1939 = vmatpush3.msra.mxu1 %v1512_v17  ;;  %v1022_v17 = vunpack.c.l.bf16 %v983_v15 }
 0x412   :  { %1912 = vmatpush3.msra.mxu0 %v2378_v2  ;;  %1940 = vmatprep.subr.mxu1 %v1509_v60  ;;  %v1504_v2 = vunpack.c.l.bf16 %v1503_v19  ;;  %v1014_v19 = vunpack.c.l.bf16 %v976_v53 }
 0x413   :  { %1914 = vmatmul.mubr.msk.f32.vlgmr.msra.gmra.mxu0 %vm572_vm1, %v675_v51  ;;  %1941 = vmatpush3.msra.mxu1 %v1509_v60  ;;  %v1025_v51 = vunpack.c.h.bf16 %v983_v15  ;;  %v979_v60 = vld [vmem:[#allocation7 + $0x50] ss:$12 sps:$4 sm:$0xff]  }
 0x414   :  { %1125 = vmatprep.mubr.f32.mxu0 %v2214_v14  ;;  %1942 = vmatprep.subr.mxu1 %v1508_v61  ;;  %v1016_v26 = vunpack.c.l.bf16 %v979_v60 }
 0x415   :  { %1943 = vmatpush3.msra.mxu1 %v1508_v61  ;;  %1061 = vmatprep.subr.mxu0 %v1042_v29  ;;  %v1015_v61 = vunpack.c.h.bf16 %v976_v53 }
 0x416   :  { %1944 = vmatprep.subr.mxu1 %v1505_v20  ;;  %1062 = vmatpush1.msra.mxu0 %v1041_v28  ;;  %v968_v28 = vld [vmem:[#allocation7 + $0x18] sm:$0xff] }
 0x417   :  { %1945 = vmatpush3.msra.mxu1 %v1505_v20  ;;  %1063 = vmatprep.subr.mxu0 %v1039_v30  ;;  %v1012_v20 = vunpack.c.h.bf16 %v974_v18  ;;  %v1003_v34 = vunpack.c.h.bf16 %v968_v28 }
 0x418   :  { %1946 = vmatprep.subr.mxu1 %v1504_v2  ;;  %1064 = vmatpush1.msra.mxu0 %v1038_v32  ;;  %v966_v32 = vld [vmem:[#allocation7 + $0xc] sm:$0xff] }
 0x419   :  { %1947 = vmatpush3.msra.mxu1 %v1504_v2  ;;  %1065 = vmatprep.subr.mxu0 %v1036_v35  ;;  %v972_v2 = vld [vmem:[#allocation7 + $0x30] sm:$0xff] }
 0x41a   :  { %1951 = vmatprep.subr.mxu1 %v1043_v33  ;;  %1066 = vmatpush1.msra.mxu0 %v1035_v41  ;;  %v1009_v25 = vunpack.c.h.bf16 %v972_v2  ;;  %v1008_v27 = vunpack.c.l.bf16 %v972_v2  ;;  %v964_v41 = vld [vmem:[#allocation7] sm:$0xff]  ;;  %v1658_v2 = vld [vmem:[#allocation8 + $0xb0] sm:$0xff]  }
 0x41b   :  { %1067 = vmatprep.subr.mxu0 %v1033_v42  ;;  %v1000_v42 = vunpack.c.h.bf16 %v966_v32 }
 0x41c   :  { %1068 = vmatpush1.msra.mxu0 %v1032_v43 }
 0x4c7   :  { %v745_v21 = vpop.f32.mrf.mxu0 }
 0x4c8   :  { %1948 = vmatprep.mubr.f32.mxu1 %v745_v21  ;;  %v1011_v21 = vunpack.c.l.bf16 %v974_v18  ;;  %v1564_v18 = vunpack.c.l.bf16 %v1643_v13 }
 0x4c9   :  { %v1900_v22 = vpop.f32.mrf.mxu0 }
 0x4ca   :  { %v1019_v22 = vunpack.c.h.bf16 %v979_v60  ;;  %v1642_v60 = vld [vmem:[#allocation8 + $0x30] sm:$0xff]  }
 0x4d3   :  { %v818_v23 = vpop.f32.mrf.mxu0 }
 0x4d4   :  { %1949 = vmatmul.mubr.f32.vlgmr.msra.gmra.mxu1 %v818_v23  ;;  %v970_v23 = vld [vmem:[#allocation7 + $0x24] sm:$0xff] }
 0x4d5   :  { %v1915_v24 = vpop.f32.mrf.mxu0  ;;  %1952 = vmatpush3.msra.mxu1 %v1043_v33  ;;  %v1006_v29 = vunpack.c.h.bf16 %v970_v23  ;;  %v1005_v31 = vunpack.c.l.bf16 %v970_v23  ;;  %v971_v33 = vld [vmem:[#allocation7 + $0x20] ss:$12 sps:$4 sm:$0xff]  }
 0x4d6   :  { %1953 = vmatprep.subr.mxu1 %v1040_v38  ;;  %v975_v24 = vld [vmem:[#allocation7 + $0x38] ss:$12 sps:$4 sm:$0xff]   ;;  %v1007_v43 = vunpack.c.h.bf16 %v971_v33 }
 0x4d7   :  { %1954 = vmatpush3.msra.mxu1 %v1040_v38  ;;  %v1013_v30 = vunpack.c.h.bf16 %v975_v24  ;;  %v1010_v35 = vunpack.c.l.bf16 %v975_v24  ;;  %v1002_v38 = vunpack.c.l.bf16 %v968_v28  ;;  %v1649_v24 = vld [vmem:[#allocation8 + $0x68] sm:$0xff]   ;;  %v1625_v28 = vunpack.c.h.bf16 %v1658_v2 }
 0x4d8   :  { %1955 = vmatprep.subr.mxu1 %v1037_v55 }
 0x4d9   :  { %1956 = vmatpush3.msra.mxu1 %v1037_v55 }
 0x4da   :  { %1957 = vmatprep.subr.mxu1 %v1034_v56 }
 0x4db   :  { %1958 = vmatpush3.msra.mxu1 %v1034_v56 }
 0x4dc   :  { %1959 = vmatprep.subr.mxu1 %v1031_v6 }
 0x4dd   :  { %1960 = vmatpush3.msra.mxu1 %v1031_v6 }
 0x4de   :  { %1961 = vmatprep.subr.mxu1 %v1028_v11 }
 0x4df   :  { %1962 = vmatpush3.msra.mxu1 %v1028_v11 }
 0x4e0   :  { %1963 = vmatprep.subr.mxu1 %v1025_v51 }
 0x4e1   :  { %1964 = vmatpush3.msra.mxu1 %v1025_v51  ;;  %v1565_v51 = vunpack.c.h.bf16 %v1643_v13 }
 0x4e2   :  { %1965 = vmatprep.subr.mxu1 %v1022_v17 }
 0x4e3   :  { %1966 = vmatpush3.msra.mxu1 %v1022_v17  ;;  %v1650_v17 = vld [vmem:[#allocation8 + $0x70] sm:$0xff]  }
 0x4e4   :  { %1967 = vmatprep.subr.mxu1 %v1019_v22 }
 0x4e5   :  { %1968 = vmatpush3.msra.mxu1 %v1019_v22  ;;  %v1561_v22 = vunpack.c.h.bf16 %v1642_v60 }
 0x4e6   :  { %1969 = vmatprep.subr.mxu1 %v1016_v26 }
 0x4e7   :  { %1970 = vmatpush3.msra.mxu1 %v1016_v26  ;;  %v1641_v26 = vld [vmem:[#allocation8 + $0x28] sm:$0xff]  }
 0x4e8   :  { %1971 = vmatprep.subr.mxu1 %v1013_v30 }
 0x4e9   :  { %1972 = vmatpush3.msra.mxu1 %v1013_v30  ;;  %v1657_v30 = vld [vmem:[#allocation8 + $0xa8] sm:$0xff]  }
 0x4ea   :  { %1973 = vmatprep.subr.mxu1 %v1010_v35 }
 0x4eb   :  { %1974 = vmatpush3.msra.mxu1 %v1010_v35  ;;  %v1556_v35 = vunpack.c.l.bf16 %v1641_v26 }
 0x4ec   :  { %1975 = vmatprep.subr.mxu1 %v1007_v43 }
 0x4ed   :  { %1976 = vmatpush3.msra.mxu1 %v1007_v43 }
 0x594   :  { %v1950_v47 = vpop.f32.mrf.mxu1 }
 0x595   :  { %v933_v50 = vadd.f32 %v1950_v47, %v1500_v48  ;;  %v999_v47 = vunpack.c.l.bf16 %v966_v32  ;;  %v1648_v32 = vld [vmem:[#allocation8 + $0x60] sm:$0xff]  }
 0x596   :  { %v927_v49 = vpop.f32.mrf.mxu1 }
 0x597   :  { %v928_v40 = vadd.f32 %v1500_v48, %v927_v49  ;;  %v2455_v44 = vadd.f32 %v933_v50, %v2309_v0  ;;  %v1027_v0 = vunpack.c.h.bf16 %v984_v63  ;;  %v997_v48 = vunpack.c.h.bf16 %v964_v41 }
 0x598   :  { %v1004_v49 = vunpack.c.l.bf16 %v971_v33  ;;  %v996_v50 = vunpack.c.l.bf16 %v964_v41  ;;  %v1588_v33 = vunpack.c.l.bf16 %v1649_v24  ;;  %v1585_v41 = vunpack.c.h.bf16 %v1648_v32 }
 0x599   :  { %v2452_v54 = vadd.f32 %v928_v40, %v2314_v1  ;;  %v945_v46 = vmul.f32 %v2455_v44, %v2455_v44  ;;  %v1030_v1 = vunpack.c.h.bf16 %v986_v57  ;;  %v967_v40 = vld [vmem:[#allocation7 + $0x8] ss:$12 sps:$4 sm:$0xff]   ;;  %v1651_v57 = vld [vmem:[#allocation8 + $0x78] sm:$0xff]  }
 0x59a   :  { %1977 = vmatprep.subr.mxu1 %v1004_v49  ;;  %v1597_v58 = vunpack.c.h.bf16 %v1651_v57  ;;  %v1596_v53 = vunpack.c.l.bf16 %v1651_v57  ;;  %v1655_v57 = vld [vmem:[#allocation8 + $0x98] sm:$0xff]  }
 0x59b   :  { %938 = vadd.xlane.f32.xlu0 %v2452_v54  ;;  %v944_v45 = vmul.f32 %v2452_v54, %v2452_v54  ;;  %1069 = vmatprep.subr.mxu0 %v1030_v1 }
 0x59c   :  { %1070 = vmatpush1.msra.mxu0 %v1029_v62  ;;  %1978 = vmatpush3.msra.mxu1 %v1004_v49  ;;  %v1659_v62 = vld [vmem:[#allocation8 + $0xb8] sm:$0xff]   ;;  %v1584_v49 = vunpack.c.l.bf16 %v1648_v32 }
 0x59d   :  { %946 = vadd.xlane.f32.xlu1 %v944_v45  ;;  %1071 = vmatprep.subr.mxu0 %v1027_v0  ;;  %v1001_v45 = vunpack.c.h.bf16 %v967_v40  ;;  %v1629_v1 = vunpack.c.h.bf16 %v1659_v62  ;;  %v1628_v23 = vunpack.c.l.bf16 %v1659_v62 }
 0x59e   :  { %1072 = vmatpush1.msra.mxu0 %v1026_v3 }
 0x59f   :  { %940 = vadd.xlane.f32.xlu0 %v2455_v44  ;;  %1073 = vmatprep.subr.mxu0 %v1024_v5 }
 0x5a0   :  { %1074 = vmatpush1.msra.mxu0 %v1023_v8  ;;  %1979 = vmatprep.subr.mxu1 %v1001_v45 }
 0x5a1   :  { %948 = vadd.xlane.f32.xlu1 %v945_v46  ;;  %1075 = vmatprep.subr.mxu0 %v1021_v10  ;;  %v998_v46 = vunpack.c.l.bf16 %v967_v40 }
 0x5a2   :  { %1076 = vmatpush1.msra.mxu0 %v1020_v12  ;;  %1980 = vmatpush3.msra.mxu1 %v1001_v45 }
 0x5a3   :  { %1077 = vmatprep.subr.mxu0 %v1018_v16  ;;  %1981 = vmatprep.subr.mxu1 %v998_v46 }
 0x5a4   :  { %1078 = vmatpush1.msra.mxu0 %v1017_v52  ;;  %1982 = vmatpush3.msra.mxu1 %v998_v46 }
 0x5a5   :  { %1079 = vmatprep.subr.mxu0 %v1015_v61  ;;  %1986 = vmatprep.subr.mxu1 %v1629_v1 }
 0x5a6   :  { %1080 = vmatpush1.msra.mxu0 %v1014_v19 }
 0x5a7   :  { %1081 = vmatprep.subr.mxu0 %v1012_v20  ;;  %v1593_v20 = vunpack.c.h.bf16 %v1650_v17 }
 0x5a8   :  { %1082 = vmatpush1.msra.mxu0 %v1011_v21 }
 0x5a9   :  { %1083 = vmatprep.subr.mxu0 %v1009_v25  ;;  %v1592_v25 = vunpack.c.l.bf16 %v1650_v17 }
 0x5aa   :  { %1084 = vmatpush1.msra.mxu0 %v1008_v27  ;;  %v1560_v27 = vunpack.c.l.bf16 %v1642_v60  ;;  %v1535_v60 = vld [vmem:[#allocation8] sm:$0xff]  }
 0x5ab   :  { %1085 = vmatprep.subr.mxu0 %v1006_v29  ;;  %v1589_v29 = vunpack.c.h.bf16 %v1649_v24  ;;  %v1044_v24 = vld [vmem:[%s2492_s6] sm:$0x7] }
 0x5ac   :  { %1086 = vmatpush1.msra.mxu0 %v1005_v31  ;;  %v1624_v31 = vunpack.c.l.bf16 %v1658_v2  ;;  %v1536_v2 = vunpack.c.l.bf16 %v1535_v60 }
 0x5ad   :  { %1087 = vmatprep.subr.mxu0 %v1003_v34  ;;  %v1640_v34 = vld [vmem:[#allocation8 + $0x20] sm:$0xff]  }
 0x5ae   :  { %1088 = vmatpush1.msra.mxu0 %v1002_v38  ;;  %v1621_v38 = vunpack.c.h.bf16 %v1657_v30  ;;  %v1553_v43 = vunpack.c.h.bf16 %v1640_v34  ;;  %v1552_v40 = vunpack.c.l.bf16 %v1640_v34 }
 0x5af   :  { %1089 = vmatprep.subr.mxu0 %v1000_v42  ;;  %v1656_v42 = vld [vmem:[#allocation8 + $0xa0] sm:$0xff]  }
 0x5b0   :  { %1090 = vmatpush1.msra.mxu0 %v999_v47  ;;  %v1620_v47 = vunpack.c.l.bf16 %v1657_v30  ;;  %v1617_v45 = vunpack.c.h.bf16 %v1656_v42  ;;  %v1616_v62 = vunpack.c.l.bf16 %v1656_v42  ;;  %v1057_v30 = vrot.slane %v1044_v24, %v244_v37 }
 0x5b1   :  { %1091 = vmatprep.subr.mxu0 %v997_v48  ;;  %v1647_v48 = vld [vmem:[#allocation8 + $0x58] sm:$0xff]  }
 0x5b2   :  { %1092 = vmatpush1.msra.mxu0 %v996_v50  ;;  %v1639_v50 = vld [vmem:[#allocation8 + $0x18] sm:$0xff]   ;;  %v1581_v46 = vunpack.c.h.bf16 %v1647_v48 }
 0x5b3   :  { %1750 = vmatprep.subr.mxu0 %v1597_v58  ;;  %v1549_v58 = vunpack.c.h.bf16 %v1639_v50 }
 0x624   :  { %v939_v55 = vpop.xlane.xlu0 %938 }
 0x625   :  { %v942_v63 = vmul.f32 0.013888889, %v939_v55  ;;  %v1580_v55 = vunpack.c.l.bf16 %v1647_v48 }
 0x626   :  { %v947_v0 = vpop.xlane.xlu1 %946 }
 0x627   :  { %v952_v56 = vmul.f32 %v942_v63, %v942_v63  ;;  %v950_v3 = vmul.f32 0.013888889, %v947_v0  ;;  %v956_v15 = vsub.f32 %v2452_v54, %v942_v63  ;;  %v1638_v63 = vld [vmem:[#allocation8 + $0x10] sm:$0xff]   ;;  %v1548_v0 = vunpack.c.l.bf16 %v1639_v50  ;;  %v1501_v50 = vld [vmem:[%s2494_s8] ss:$0 sm:$0xff]  ;;  %s2172_s8 = scalar_lea.vmem %s1482_s26, 256 }
 0x628   :  { %v941_v59 = vpop.xlane.xlu0 %940  ;;  %p2173_p2 = scmp.ne.s32.totalorder %s1482_s26, %s2172_s8  ;;  %p2178_p4 = scmp.lt.s32.totalorder %s2172_s8, %s2172_s8 }
 0x629   :  { %v954_v4 = vsub.f32 %v950_v3, %v952_v56  ;;  %v943_v5 = vmul.f32 0.013888889, %v941_v59  ;;  %v1613_v56 = vunpack.c.h.bf16 %v1655_v57  ;;  %v1545_v59 = vunpack.c.h.bf16 %v1638_v63 }
 0x62a   :  { %v949_v6 = vpop.xlane.xlu1 %948  ;;  %p2179_p5 = por %p2178_p4, %p2177_p3 }
 0x62b   :  { %v958_v8 = vadd.f32 1e-05, %v954_v4  ;;  %v953_v9 = vmul.f32 %v943_v5, %v943_v5  ;;  %v951_v10 = vmul.f32 0.013888889, %v949_v6  ;;  %v957_v19 = vsub.f32 %v2455_v44, %v943_v5 }
 0x62c   :  { %v1612_v4 = vunpack.c.l.bf16 %v1655_v57  ;;  %v1544_v6 = vunpack.c.l.bf16 %v1638_v63  ;;  %p2180_p6 = pnand %p2179_p5, %p2173_p2 }
 0x62d   :  { %2048 = vrsqrt.f32 %v958_v8  ;;  %v955_v11 = vsub.f32 %v951_v10, %v953_v9  ;;  %v1645_v8 = vld [vmem:[#allocation8 + $0x48] sm:$0xff]   ;;  %v1654_v9 = vld [vmem:[#allocation8 + $0x90] sm:$0xff]  }
 0x62e   :  { %v1573_v10 = vunpack.c.h.bf16 %v1645_v8 }
 0x62f   :  { %v959_v12 = vadd.f32 1e-05, %v955_v11  ;;  %v1609_v11 = vunpack.c.h.bf16 %v1654_v9 }
 0x631   :  { %2050 = vrsqrt.f32 %v959_v12  ;;  %v1637_v12 = vld [vmem:[#allocation8 + $0x8] sm:$0xff]  }
 0x632   :  { %v1541_v13 = vunpack.c.h.bf16 %v1637_v12 }
 0x63a   :  { %v2049_v16 = vpop.eup %2048 }
 0x63b   :  { %v962_v52 = vmul.f32 %v2049_v16, %v956_v15  ;;  %v1572_v15 = vunpack.c.l.bf16 %v1645_v8  ;;  %v1608_v16 = vunpack.c.l.bf16 %v1654_v9 }
 0x63d   :  { %1126 = vmatmul.mubr.f32.vlgmr.msra.gmra.mxu0 %v962_v52  ;;  %1983 = vmatprep.mubr.f32.mxu1 %v962_v52  ;;  %v1644_v52 = vld [vmem:[#allocation8 + $0x40] sm:$0xff]  }
 0x63e   :  { %v2051_v61 = vpop.eup %2050  ;;  %1131 = vmatprep.mubr.f32.mxu0 %v2214_v14  ;;  %1751 = vmatpush3.msra.mxu0 %v1565_v51  ;;  %v1557_v14 = vunpack.c.h.bf16 %v1641_v26  ;;  %v1540_v51 = vunpack.c.l.bf16 %v1637_v12  ;;  %v1569_v17 = vunpack.c.h.bf16 %v1644_v52  ;;  %v1053_v26 = vrot.slane %v1044_v24, %v240_v39 }
 0x63f   :  { %v963_v21 = vmul.f32 %v2051_v61, %v957_v19  ;;  %1752 = vmatprep.subr.mxu0 %v1596_v53  ;;  %v1653_v53 = vld [vmem:[#allocation8 + $0x88] sm:$0xff]   ;;  %v1537_v19 = vunpack.c.h.bf16 %v1535_v60  ;;  %v1568_v61 = vunpack.c.l.bf16 %v1644_v52 }
 0x640   :  { %1753 = vmatpush3.msra.mxu0 %v1564_v18  ;;  %v1605_v18 = vunpack.c.h.bf16 %v1653_v53 }
 0x641   :  { %1132 = vmatmul.mubr.f32.gmra.mxu0 %v963_v21  ;;  %1984 = vmatmul.mubr.f32.vlgmr.msra.gmra.mxu1 %v963_v21  ;;  %v1652_v21 = vld [vmem:[#allocation8 + $0x80] sm:$0xff]  }
 0x642   :  { %1754 = vmatprep.subr.mxu0 %v1593_v20  ;;  %1987 = vmatpush3.msra.mxu1 %v1629_v1  ;;  %v1646_v1 = vld [vmem:[#allocation8 + $0x50] sm:$0xff]   ;;  %v1604_v20 = vunpack.c.l.bf16 %v1653_v53 }
 0x643   :  { %1755 = vmatpush3.msra.mxu0 %v1561_v22  ;;  %1988 = vmatprep.subr.mxu1 %v1628_v23  ;;  %v1577_v3 = vunpack.c.h.bf16 %v1646_v1  ;;  %v1576_v5 = vunpack.c.l.bf16 %v1646_v1  ;;  %v1601_v22 = vunpack.c.h.bf16 %v1652_v21 }
 0x644   :  { %1756 = vmatprep.subr.mxu0 %v1592_v25  ;;  %1989 = vmatpush3.msra.mxu1 %v1628_v23  ;;  %v1600_v23 = vunpack.c.l.bf16 %v1652_v21  ;;  %v1049_v25 = vrot.slane %v1044_v24, %v236_v7 }
 0x645   :  { %1757 = vmatpush3.msra.mxu0 %v1560_v27  ;;  %1990 = vmatprep.subr.mxu1 %v1625_v28 }
 0x646   :  { %1758 = vmatprep.subr.mxu0 %v1589_v29  ;;  %1991 = vmatpush3.msra.mxu1 %v1625_v28 }
 0x647   :  { %1759 = vmatpush3.msra.mxu0 %v1557_v14  ;;  %1992 = vmatprep.subr.mxu1 %v1624_v31 }
 0x648   :  { %1760 = vmatprep.subr.mxu0 %v1588_v33  ;;  %1993 = vmatpush3.msra.mxu1 %v1624_v31 }
 0x649   :  { %1761 = vmatpush3.msra.mxu0 %v1556_v35  ;;  %1994 = vmatprep.subr.mxu1 %v1621_v38 }
 0x64a   :  { %1762 = vmatprep.subr.mxu0 %v1585_v41  ;;  %1995 = vmatpush3.msra.mxu1 %v1621_v38 }
 0x64b   :  { %1763 = vmatpush3.msra.mxu0 %v1553_v43  ;;  %1996 = vmatprep.subr.mxu1 %v1620_v47 }
 0x64c   :  { %1764 = vmatprep.subr.mxu0 %v1584_v49  ;;  %1997 = vmatpush3.msra.mxu1 %v1620_v47 }
 0x64d   :  { %1765 = vmatpush3.msra.mxu0 %v1552_v40  ;;  %1998 = vmatprep.subr.mxu1 %v1617_v45 }
 0x64e   :  { %1766 = vmatprep.subr.mxu0 %v1581_v46  ;;  %1999 = vmatpush3.msra.mxu1 %v1617_v45 }
 0x64f   :  { %1767 = vmatpush3.msra.mxu0 %v1549_v58  ;;  %2000 = vmatprep.subr.mxu1 %v1616_v62 }
 0x650   :  { %1768 = vmatprep.subr.mxu0 %v1580_v55  ;;  %2001 = vmatpush3.msra.mxu1 %v1616_v62 }
 0x651   :  { %1769 = vmatpush3.msra.mxu0 %v1548_v0  ;;  %2002 = vmatprep.subr.mxu1 %v1613_v56 }
 0x652   :  { %1770 = vmatprep.subr.mxu0 %v1577_v3  ;;  %2003 = vmatpush3.msra.mxu1 %v1613_v56 }
 0x653   :  { %1771 = vmatpush3.msra.mxu0 %v1545_v59  ;;  %2004 = vmatprep.subr.mxu1 %v1612_v4 }
 0x654   :  { %1772 = vmatprep.subr.mxu0 %v1576_v5  ;;  %2005 = vmatpush3.msra.mxu1 %v1612_v4 }
 0x655   :  { %1773 = vmatpush3.msra.mxu0 %v1544_v6  ;;  %2006 = vmatprep.subr.mxu1 %v1609_v11 }
 0x656   :  { %1774 = vmatprep.subr.mxu0 %v1573_v10  ;;  %2007 = vmatpush3.msra.mxu1 %v1609_v11 }
 0x657   :  { %1775 = vmatpush3.msra.mxu0 %v1541_v13  ;;  %2008 = vmatprep.subr.mxu1 %v1608_v16 }
 0x658   :  { %1776 = vmatprep.subr.mxu0 %v1572_v15  ;;  %2009 = vmatpush3.msra.mxu1 %v1608_v16 }
 0x659   :  { %1777 = vmatpush3.msra.mxu0 %v1540_v51  ;;  %2010 = vmatprep.subr.mxu1 %v1605_v18 }
 0x65a   :  { %1778 = vmatprep.subr.mxu0 %v1569_v17  ;;  %2011 = vmatpush3.msra.mxu1 %v1605_v18 }
 0x65b   :  { %1779 = vmatpush3.msra.mxu0 %v1537_v19  ;;  %2012 = vmatprep.subr.mxu1 %v1604_v20 }
 0x65c   :  { %1780 = vmatprep.subr.mxu0 %v1568_v61  ;;  %2013 = vmatpush3.msra.mxu1 %v1604_v20 }
 0x65d   :  { %1781 = vmatpush3.msra.mxu0 %v1536_v2  ;;  %2014 = vmatprep.subr.mxu1 %v1601_v22 }
 0x65e   :  { %2015 = vmatpush3.msra.mxu1 %v1601_v22 }
 0x65f   :  { %2016 = vmatprep.subr.mxu1 %v1600_v23 }
 0x660   :  { %2017 = vmatpush3.msra.mxu1 %v1600_v23 }
 0x6fd   :  { %v1127_v27 = vpop.f32.mrf.mxu0 }
 0x6fe   :  { %v1128_v28 = vadd.f32 %v1127_v27, %v1049_v25 }
 0x6ff   :  { %v1129_v29 = vpop.f32.mrf.mxu0 }
 0x700   :  { %v1130_v14 = vadd.f32 %v1129_v29, %v1053_v26  ;;  %v1213_v34 = vmax.f32 %v1128_v28, 0.0 }
 0x701   :  { %v1133_v31 = vpop.f32.mrf.mxu0  ;;  %v1985_v32 = vpop.f32.mrf.mxu1 }
 0x702   :  { %v1214_v33 = vmax.f32 %v1130_v14, 0.0  ;;  %v1134_v35 = vadd.f32 %v1133_v31, %v1049_v25  ;;  %v1210_v38 = vadd.f32 %v1985_v32, %v1057_v30 }
 0x703   :  { %v1135_v41 = vpop.f32.mrf.mxu0  ;;  %v1204_v42 = vpop.f32.mrf.mxu1 }
 0x704   :  { %v1136_v43 = vadd.f32 %v1135_v41, %v1053_v26  ;;  %v1205_v7 = vadd.f32 %v1204_v42, %v1057_v30  ;;  %1386 = vmatprep.mubr.f32.mxu0 %v1214_v33  ;;  %v1216_v48 = vmax.f32 %v1134_v35, 0.0  ;;  %v1218_v49 = vmax.f32 %v1210_v38, 0.0 }
 0x705   :  { %1387 = vmatmul.mubr.f32.vlgmr.msra.gmra.mxu0 %v1213_v34 }
 0x706   :  { %v1217_v39 = vmax.f32 %v1136_v43, 0.0  ;;  %v1215_v47 = vmax.f32 %v1205_v7, 0.0 }
 0x708   :  { %1391 = vmatprep.mubr.f32.mxu0 %v1217_v39  ;;  %2018 = vmatprep.mubr.f32.mxu1 %v1215_v47 }
 0x709   :  { %1392 = vmatmul.mubr.f32.gmra.mxu0 %v1216_v48  ;;  %2019 = vmatmul.mubr.f32.vlgmr.msra.gmra.mxu1 %v1218_v49 }
 0x7c5   :  { %v1782_v36 = vpop.f32.mrf.mxu0 }
 0x7c7   :  { %v1783_v37 = vpop.f32.mrf.mxu0 }
 0x7c8   :  { %v1784_v40 = vadd.f32 %v1783_v37, %v1782_v36 }
 0x7c9   :  { %v1785_v45 = vpop.f32.mrf.mxu0  ;;  %v2020_v46 = vpop.f32.mrf.mxu1 }
 0x7ca   :  { %v1389_v57 = vadd.f32 %v1784_v40, %v1501_v50 }
 0x7cb   :  { %v1786_v58 = vpop.f32.mrf.mxu0  ;;  %v1463_v62 = vpop.f32.mrf.mxu1 }
 0x7cc   :  { %v1787_v1 = vadd.f32 %v1786_v58, %v1785_v45  ;;  %v1464_v55 = vadd.f32 %v1463_v62, %v1389_v57 }
 0x7ce   :  { %v1394_v63 = vadd.f32 %v1787_v1, %v1501_v50  ;;  %v1472_v0 = vadd.f32 %v1464_v55, %v2452_v54 }
 0x7d0   :  { %v1469_v56 = vadd.f32 %v2020_v46, %v1394_v63  ;;  %1474 = vst [vmem:[#allocation13] sm:$0xff] %v1472_v0 }
 0x7d2   :  { %v1473_v3 = vadd.f32 %v1469_v56, %v2455_v44 }
 0x7d4   :  { %1475 = vst [vmem:[#allocation13 + $0x8] sm:$0xff] %v1473_v3 }
 0x7d5   :  { %2183 = shalt.err (!%p2180_p6)
}
 0x7d6   :  { %1487 = dma.vmem_to_hbm [thread:$0]  %s1482_s26, 256, %s2498_s12, [#allocation4], %s2211_s1, %s2211_s1, %s2212_s28  }
 0x7d7   :  { %2200 = dma.done.wait [#allocation4], 256  }
 0x7d8   :  { %2201 = vsyncadd [#allocation4], 4294967040 }
 0x7d9   :  { %1491 = vsyncpa [#allocation3], 1 }
 0x7da   :  { %1492 = vsyncpa [#allocation6], 1 }
 0x7db   :  { %1493 = vsyncpa [#allocation9], 1 }
 0x7dc   :  { %1494 = vsyncpa [#allocation12], 1 }
 0x7dd   :  { %1495 = vsyncpa [#allocation4], 1 }

</bundles_post_ra>
